<compile_context>
chip_gen: v7x
topology: tpu7x:2x2x1
jax: 0.10.0
libtpu: 0.0.40
codegen_flags: <defaults>
</compile_context>

<pallas_src>
import functools

import jax
import jax.numpy as jnp
from jax.experimental import pallas as pl
from jax.experimental.pallas import tpu as pltpu


def _round_up(x, m):
    return (x + m - 1) // m * m


def _ceil_lanes(c):
    return _round_up(max(int(c), 1), 128)


# ----------------------------------------------------------------------------
# Pallas kernel 1: Conv2d(k=3, s=2, p=1) + bias + ReLU as a 2-tap s2d matmul
# ----------------------------------------------------------------------------
def _conv_s2d_kernel(x_ref, w_ref, b_ref, o_ref, *, wp):
    """x_ref: (1, L, 8*Cin) bf16 -- packed s2d slab for one batch element
                (block index ignores the m axis -> resident across m tiles).
       w_ref: (2, 8*Cin, Cout) bf16 -- packed weights, super-tap dh in {0, 1}.
       b_ref: (1, Cout) f32
       o_ref: (1, TM, Cout) bf16 -- one tile of flattened output rows."""
    tm = o_ref.shape[1]
    # TM and wp are multiples of 8 -> both tap slices are sublane-aligned.
    m0 = pl.multiple_of(pl.program_id(1) * tm, 8)
    m1 = pl.multiple_of(m0 + wp, 8)
    a0 = x_ref[0, pl.ds(m0, tm), :]                        # (TM, 8*Cin) bf16
    a1 = x_ref[0, pl.ds(m1, tm), :]                        # (TM, 8*Cin) bf16
    # Two fat-K MXU matmuls accumulated in f32 on a per-tile accumulator
    # instead of 9 read-modify-write passes over a whole-image slab.
    acc = jnp.dot(a0, w_ref[0], preferred_element_type=jnp.float32)
    acc = acc + jnp.dot(a1, w_ref[1], preferred_element_type=jnp.float32)
    acc = acc + b_ref[...]                                 # (1, Cout) broadcast
    o_ref[0] = jnp.maximum(acc, 0.0).astype(o_ref.dtype)   # fused ReLU, 1 store


def _s2d_pack(x_nhwc, wp, l_pad):
    """(B, H, W, C) -> (B, l_pad, 8C).

    Space-to-depth phases of the zero-padded input plus a 1-column-shifted copy,
    stacked along channels, flattened row-major at padded raster width wp.
    Channel layout: ch = dw*4C + (2a + b)*C + c with phase (a, b), shift dw."""
    B, H, W, C = x_nhwc.shape
    ho, wo = H // 2, W // 2
    xp = jnp.pad(x_nhwc, ((0, 0), (1, 1), (1, 1), (0, 0)))
    # xp[b, 2i+a, 2j+bb, c] -> s4[b, i, j, (a, bb, c)]
    s4 = xp.reshape(B, ho + 1, 2, wo + 1, 2, C).transpose(0, 1, 3, 2, 4, 5)
    s4 = s4.reshape(B, ho + 1, wo + 1, 4 * C)
    # Column-shifted copy (dw = 1): s4s[..., j, :] = s4[..., j + 1, :]
    s4s = jnp.pad(s4[:, :, 1:, :], ((0, 0), (0, 0), (0, 1), (0, 0)))
    s8 = jnp.concatenate([s4, s4s], axis=-1)                         # (B,ho+1,wo+1,8C)
    s8 = jnp.pad(s8, ((0, 0), (0, 0), (0, wp - (wo + 1)), (0, 0)))   # width -> wp
    s8 = s8.reshape(B, (ho + 1) * wp, 8 * C)
    return jnp.pad(s8, ((0, 0), (0, l_pad - (ho + 1) * wp), (0, 0)))


def _pack_weights_s2d(w_oihw):
    """PyTorch (Cout, Cin, 3, 3) -> (2, 8*Cin, Cout) bf16 matching _s2d_pack."""
    cout, cin = w_oihw.shape[0], w_oihw.shape[1]
    w = jnp.transpose(w_oihw, (2, 3, 1, 0))              # (kh, kw, Cin, Cout)
    w8 = jnp.zeros((2, 2, 2, 2, cin, cout), w.dtype)     # [dh, dw, a, b, c, co]
    k_of = {(0, 0): 0, (1, 0): 1, (0, 1): 2}             # (phase, delta) -> kernel idx
    for (a, dh), kh in k_of.items():
        for (b, dw), kw in k_of.items():
            w8 = w8.at[dh, dw, a, b].set(w[kh, kw])
    return w8.reshape(2, 8 * cin, cout).astype(jnp.bfloat16)


def _conv_vmem_bytes(l_pad, c8, tm, cout):
    """Per-layer VMEM budget from actual lane-padded block bytes (review item 5)."""
    x_blk = l_pad * _ceil_lanes(c8) * 2            # bf16 input slab
    w_blk = 2 * c8 * _ceil_lanes(cout) * 2         # bf16 packed weights
    b_blk = 8 * _ceil_lanes(cout) * 4              # f32 bias row
    o_blk = tm * _ceil_lanes(cout) * 2             # bf16 output tile
    acc = tm * _ceil_lanes(cout) * 4               # f32 per-tile accumulator
    need = 2 * x_blk + w_blk + b_blk + 2 * o_blk + acc   # x / out double-buffered
    return int(min(max(int(need * 1.5) + (4 << 20), 8 << 20), 64 << 20))


def conv3x3_s2_relu(x_nhwc, w_oihw, b):
    """Conv2d(k=3, stride=2, pad=1) + ReLU.  x: NHWC, w: PyTorch OIHW.  Returns NHWC bf16."""
    B, H, W, Cin = x_nhwc.shape
    assert H % 2 == 0 and W % 2 == 0, "stride-2 / pad-1 path assumes even H, W"
    Cout = w_oihw.shape[0]
    assert Cout % 8 == 0, "Cout must be a multiple of 8 (sublane-packed output)"
    ho, wo = H // 2, W // 2

    wp = _round_up(wo + 1, 8)          # padded raster width -> sublane-aligned taps
    m2 = ho * wp                       # flattened output rows (incl. junk columns)
    # Tile size: amortizes ~0.35us/step grid overhead while keeping the f32
    # accumulator a small per-tile buffer (tunable).
    tm_max = _round_up(max(256, 65536 // Cout), 128)
    tm = min(tm_max, _round_up(m2, 8))
    m2p = _round_up(m2, tm)
    l_pad = m2p + wp                   # every tap slice stays inside the slab
    c8 = 8 * Cin
    assert (ho + 1) * wp <= l_pad and m2p + wp <= l_pad

    x8 = _s2d_pack(x_nhwc.astype(jnp.bfloat16), wp, l_pad)        # (B, l_pad, 8*Cin)
    w8 = _pack_weights_s2d(w_oihw)                                # (2, 8*Cin, Cout)
    b_row = b.reshape(1, Cout).astype(jnp.float32)

    out = pl.pallas_call(
        functools.partial(_conv_s2d_kernel, wp=wp),
        out_shape=jax.ShapeDtypeStruct((B, m2p, Cout), jnp.bfloat16),
        grid=(B, m2p // tm),
        in_specs=[
            pl.BlockSpec((1, l_pad, c8), lambda bb, mm: (bb, 0, 0)),   # resident slab
            pl.BlockSpec((2, c8, Cout), lambda bb, mm: (0, 0, 0)),
            pl.BlockSpec((1, Cout), lambda bb, mm: (0, 0)),
        ],
        out_specs=pl.BlockSpec((1, tm, Cout), lambda bb, mm: (bb, mm, 0)),
        compiler_params=pltpu.CompilerParams(
            dimension_semantics=("parallel", "parallel"),
            vmem_limit_bytes=_conv_vmem_bytes(l_pad, c8, tm, Cout),
        ),
    )(x8, w8, b_row)

    # Drop junk raster columns (ow in [Wo, wp)) and junk tile-padding rows.
    return out[:, :m2, :].reshape(B, ho, wp, Cout)[:, :, :wo, :]


# ----------------------------------------------------------------------------
# Pallas kernel 2: flat, lane-dense positional-embedding add
# ----------------------------------------------------------------------------
def _add_pos_kernel(x_ref, pos_ref, o_ref):
    # x_ref: (B, N*D) bf16, pos_ref: (1, N*D) f32, o_ref: (B, N*D) f32.
    o_ref[...] = x_ref[...].astype(jnp.float32) + pos_ref[...]


def assemble_tokens(x_tok, cls_tok, pos_emb):
    """x_tok: (B, N, D) bf16, cls_tok: (1, 1, D), pos_emb: (1, N+1, D) -> (B, N+1, D) f32."""
    B, N, D = x_tok.shape
    nd = N * D
    pos_patch = pos_emb[:, 1:, :].reshape(1, nd).astype(jnp.float32)
    need = (B * nd * 2 + nd * 4 + B * nd * 4) * 2 + (2 << 20)
    patches = pl.pallas_call(
        _add_pos_kernel,
        out_shape=jax.ShapeDtypeStruct((B, nd), jnp.float32),
        compiler_params=pltpu.CompilerParams(
            vmem_limit_bytes=int(min(max(need, 8 << 20), 64 << 20))),
    )(x_tok.reshape(B, nd), pos_patch).reshape(B, N, D)
    # cls row is O(B*D): compute + concat in the wrapper (review item 9).
    cls_row = cls_tok.astype(jnp.float32) + pos_emb[:, :1, :].astype(jnp.float32)
    cls_rows = jnp.broadcast_to(cls_row, (B, 1, D))
    return jnp.concatenate([cls_rows, patches], axis=1)


# ----------------------------------------------------------------------------
# CNNEmbedding1 forward
# ----------------------------------------------------------------------------
def cnn_embedding1_forward(x_nchw, params):
    """x_nchw: (B, 3, H, W) float32 -> (B, num_patches + 1, hidden_dim) float32."""
    x = jnp.transpose(x_nchw, (0, 2, 3, 1))                    # NCHW -> NHWC
    for (w, b) in params["convs"]:
        x = conv3x3_s2_relu(x, w, b)                           # bf16 NHWC
    B, ho, wo, D = x.shape
    # PyTorch x.flatten(2).transpose(1, 2) == row-major (oh, ow) tokens.
    x_tok = x.reshape(B, ho * wo, D)
    out = assemble_tokens(x_tok, params["cls_token"], params["pos_embedding"])
    # Dropout(p=0.0) and the Identity projection are no-ops.
    return out


def init_params(key, hidden_dim=32):
    n_filter_list = (3, 48, 96, hidden_dim)
    convs = []
    for i in range(len(n_filter_list) - 1):
        key, kw, kb = jax.random.split(key, 3)
        cin, cout = n_filter_list[i], n_filter_list[i + 1]
        w = jax.random.normal(kw, (cout, cin, 3, 3), jnp.float32) * 0.05   # OIHW
        b = jax.random.normal(kb, (cout,), jnp.float32) * 0.05
        convs.append((w, b))
    key, kc, kp = jax.random.split(key, 3)
    return {
        "convs": convs,
        "cls_token": jax.random.normal(kc, (1, 1, hidden_dim), jnp.float32),
        "pos_key": kp,
    }


if __name__ == "__main__":
    # Small, self-consistent config: image_size=16, patch_size=8, hidden_dim=32.
    # Three stride-2 convs: 16 -> 8 -> 4 -> 2, so num_patches = (16//8)**2 = 4.
    B, image_size, patch_size, hidden_dim = 2, 16, 8, 32
    num_patches = (image_size // patch_size) ** 2

    key = jax.random.PRNGKey(0)
    key, kx = jax.random.split(key)
    params = init_params(key, hidden_dim=hidden_dim)
    params["pos_embedding"] = jax.random.normal(
        params.pop("pos_key"), (1, num_patches + 1, hidden_dim), jnp.float32
    )

    x = jax.random.normal(kx, (B, 3, image_size, image_size), jnp.float32)  # NCHW

    out = jax.jit(cnn_embedding1_forward)(x, params)
    out = jax.block_until_ready(out)
    assert out.shape == (B, num_patches + 1, hidden_dim), out.shape

    # Pure-JAX reference with the same mixed-precision recipe
    # (bf16 conv operands, f32 accumulate + bias + ReLU, bf16 activations).
    ref = jnp.transpose(x, (0, 2, 3, 1)).astype(jnp.bfloat16)
    for (w, b) in params["convs"]:
        y = jax.lax.conv_general_dilated(
            jnp.transpose(ref, (0, 3, 1, 2)).astype(jnp.bfloat16),
            w.astype(jnp.bfloat16),
            (2, 2), ((1, 1), (1, 1)),
            dimension_numbers=("NCHW", "OIHW", "NCHW"),
            preferred_element_type=jnp.float32,
        )
        y = jnp.maximum(y + b[None, :, None, None], 0.0)
        ref = jnp.transpose(y, (0, 2, 3, 1)).astype(jnp.bfloat16)
    ref = ref.astype(jnp.float32).reshape(B, -1, hidden_dim)
    cls = jnp.broadcast_to(params["cls_token"], (B, 1, hidden_dim))
    ref = jnp.concatenate([cls, ref], axis=1) + params["pos_embedding"]
    assert jnp.allclose(out, ref, atol=2e-2, rtol=2e-2), (
        float(jnp.max(jnp.abs(out - ref))))

    print("KERNEL_OK")
</pallas_src>

<mosaic_0001>
module attributes {stable_mosaic.version = 11 : i64} {
  func.func @_conv_s2d_kernel(%arg0: i32, %arg1: i32, %arg2: memref<1x144x24xbf16, #tpu.memory_space<vmem>>, %arg3: memref<2x24x48xbf16, #tpu.memory_space<vmem>>, %arg4: memref<1x48xf32, #tpu.memory_space<vmem>>, %arg5: memref<1x128x48xbf16, #tpu.memory_space<vmem>>) attributes {dimension_semantics = [#tpu.dimension_semantics<parallel>, #tpu.dimension_semantics<parallel>], iteration_bounds = array<i64: 2, 1>, scalar_prefetch = 0 : i64, scratch_operands = 0 : i64, tpu.core_type = #tpu.core_type<tc>, window_params = [{transform_indices = @transform_0, window_bounds = array<i64: 1, 144, 24>}, {pipeline_mode = #tpu.pipeline_mode<synchronous>, transform_indices = @transform_1, window_bounds = array<i64: 2, 24, 48>}, {pipeline_mode = #tpu.pipeline_mode<synchronous>, transform_indices = @transform_2, window_bounds = array<i64: 1, 48>}, {transform_indices = @transform_3, window_bounds = array<i64: 1, 128, 48>}]} {
    %c128_i32 = arith.constant 128 : i32
    %0 = arith.muli %arg1, %c128_i32 : i32
    %1 = tpu.assume_multiple %0, 8 : i32
    %c16_i32 = arith.constant 16 : i32
    %2 = arith.addi %1, %c16_i32 : i32
    %3 = tpu.assume_multiple %2, 8 : i32
    %c0 = arith.constant 0 : index
    %4 = arith.index_cast %1 : i32 to index
    %c0_0 = arith.constant 0 : index
    %5 = vector.load %arg2[%c0, %4, %c0_0] : memref<1x144x24xbf16, #tpu.memory_space<vmem>>, vector<1x128x24xbf16>
    %6 = vector.shape_cast %5 : vector<1x128x24xbf16> to vector<128x24xbf16>
    %c0_1 = arith.constant 0 : index
    %7 = arith.index_cast %3 : i32 to index
    %c0_2 = arith.constant 0 : index
    %8 = vector.load %arg2[%c0_1, %7, %c0_2] : memref<1x144x24xbf16, #tpu.memory_space<vmem>>, vector<1x128x24xbf16>
    %9 = vector.shape_cast %8 : vector<1x128x24xbf16> to vector<128x24xbf16>
    %c0_3 = arith.constant 0 : index
    %c0_4 = arith.constant 0 : index
    %c0_5 = arith.constant 0 : index
    %10 = vector.load %arg3[%c0_3, %c0_4, %c0_5] : memref<2x24x48xbf16, #tpu.memory_space<vmem>>, vector<1x24x48xbf16>
    %11 = vector.shape_cast %10 : vector<1x24x48xbf16> to vector<24x48xbf16>
    %cst = arith.constant dense<0.000000e+00> : vector<128x48xf32>
    %12 = tpu.matmul %6, %11, %cst {dimension_numbers = #tpu.dot_dimension_numbers<[1], [0], [0], [1], [0, 0, 1, 1], [], []>} : vector<128x24xbf16>, vector<24x48xbf16>, vector<128x48xf32> -> vector<128x48xf32>
    %c1 = arith.constant 1 : index
    %c0_6 = arith.constant 0 : index
    %c0_7 = arith.constant 0 : index
    %13 = vector.load %arg3[%c1, %c0_6, %c0_7] : memref<2x24x48xbf16, #tpu.memory_space<vmem>>, vector<1x24x48xbf16>
    %14 = vector.shape_cast %13 : vector<1x24x48xbf16> to vector<24x48xbf16>
    %cst_8 = arith.constant dense<0.000000e+00> : vector<128x48xf32>
    %15 = tpu.matmul %9, %14, %cst_8 {dimension_numbers = #tpu.dot_dimension_numbers<[1], [0], [0], [1], [0, 0, 1, 1], [], []>} : vector<128x24xbf16>, vector<24x48xbf16>, vector<128x48xf32> -> vector<128x48xf32>
    %16 = arith.addf %12, %15 : vector<128x48xf32>
    %c0_9 = arith.constant 0 : index
    %c0_10 = arith.constant 0 : index
    %17 = vector.load %arg4[%c0_9, %c0_10] : memref<1x48xf32, #tpu.memory_space<vmem>>, vector<1x48xf32>
    %18 = vector.broadcast %17 : vector<1x48xf32> to vector<128x48xf32>
    %19 = arith.addf %16, %18 : vector<128x48xf32>
    %cst_11 = arith.constant 0.000000e+00 : f32
    %20 = vector.broadcast %cst_11 : f32 to vector<128x48xf32>
    %21 = arith.maximumf %19, %20 : vector<128x48xf32>
    %22 = arith.truncf %21 : vector<128x48xf32> to vector<128x48xbf16>
    %c0_12 = arith.constant 0 : index
    %c0_13 = arith.constant 0 : index
    %c0_14 = arith.constant 0 : index
    %23 = vector.load %arg5[%c0_12, %c0_13, %c0_14] : memref<1x128x48xbf16, #tpu.memory_space<vmem>>, vector<1x128x48xbf16>
    %24 = vector.shape_cast %23 : vector<1x128x48xbf16> to vector<128x48xbf16>
    %25 = vector.shape_cast %22 : vector<128x48xbf16> to vector<1x128x48xbf16>
    tpu.vector_store %arg5[%c0_12, %c0_13, %c0_14], %25 {strides = array<i32>} : memref<1x128x48xbf16, #tpu.memory_space<vmem>>, vector<1x128x48xbf16>,
    return
  }
  func.func @transform_0(%arg0: i32, %arg1: i32) -> (i32, i32, i32) {
    %c0_i32 = arith.constant 0 : i32
    %c0_i32_0 = arith.constant 0 : i32
    %c0_i32_1 = arith.constant 0 : i32
    return %arg0, %c0_i32, %c0_i32_0 : i32, i32, i32
  }
  func.func @transform_1(%arg0: i32, %arg1: i32) -> (i32, i32, i32) {
    %c0_i32 = arith.constant 0 : i32
    %c0_i32_0 = arith.constant 0 : i32
    %c0_i32_1 = arith.constant 0 : i32
    %c0_i32_2 = arith.constant 0 : i32
    return %c0_i32, %c0_i32_0, %c0_i32_1 : i32, i32, i32
  }
  func.func @transform_2(%arg0: i32, %arg1: i32) -> (i32, i32) {
    %c0_i32 = arith.constant 0 : i32
    %c0_i32_0 = arith.constant 0 : i32
    %c0_i32_1 = arith.constant 0 : i32
    return %c0_i32, %c0_i32_0 : i32, i32
  }
  func.func @transform_3(%arg0: i32, %arg1: i32) -> (i32, i32, i32) {
    %c0_i32 = arith.constant 0 : i32
    %c0_i32_0 = arith.constant 0 : i32
    return %arg0, %arg1, %c0_i32 : i32, i32, i32
  }
}

module attributes {stable_mosaic.version = 11 : i64} {
  func.func @_conv_s2d_kernel(%arg0: i32, %arg1: i32, %arg2: memref<1x40x384xbf16, #tpu.memory_space<vmem>>, %arg3: memref<2x384x96xbf16, #tpu.memory_space<vmem>>, %arg4: memref<1x96xf32, #tpu.memory_space<vmem>>, %arg5: memref<1x32x96xbf16, #tpu.memory_space<vmem>>) attributes {dimension_semantics = [#tpu.dimension_semantics<parallel>, #tpu.dimension_semantics<parallel>], iteration_bounds = array<i64: 2, 1>, scalar_prefetch = 0 : i64, scratch_operands = 0 : i64, tpu.core_type = #tpu.core_type<tc>, window_params = [{transform_indices = @transform_0, window_bounds = array<i64: 1, 40, 384>}, {pipeline_mode = #tpu.pipeline_mode<synchronous>, transform_indices = @transform_1, window_bounds = array<i64: 2, 384, 96>}, {pipeline_mode = #tpu.pipeline_mode<synchronous>, transform_indices = @transform_2, window_bounds = array<i64: 1, 96>}, {transform_indices = @transform_3, window_bounds = array<i64: 1, 32, 96>}]} {
    %c32_i32 = arith.constant 32 : i32
    %0 = arith.muli %arg1, %c32_i32 : i32
    %1 = tpu.assume_multiple %0, 8 : i32
    %c8_i32 = arith.constant 8 : i32
    %2 = arith.addi %1, %c8_i32 : i32
    %3 = tpu.assume_multiple %2, 8 : i32
    %c0 = arith.constant 0 : index
    %4 = arith.index_cast %1 : i32 to index
    %c0_0 = arith.constant 0 : index
    %5 = vector.load %arg2[%c0, %4, %c0_0] : memref<1x40x384xbf16, #tpu.memory_space<vmem>>, vector<1x32x384xbf16>
    %6 = vector.shape_cast %5 : vector<1x32x384xbf16> to vector<32x384xbf16>
    %c0_1 = arith.constant 0 : index
    %7 = arith.index_cast %3 : i32 to index
    %c0_2 = arith.constant 0 : index
    %8 = vector.load %arg2[%c0_1, %7, %c0_2] : memref<1x40x384xbf16, #tpu.memory_space<vmem>>, vector<1x32x384xbf16>
    %9 = vector.shape_cast %8 : vector<1x32x384xbf16> to vector<32x384xbf16>
    %c0_3 = arith.constant 0 : index
    %c0_4 = arith.constant 0 : index
    %c0_5 = arith.constant 0 : index
    %10 = vector.load %arg3[%c0_3, %c0_4, %c0_5] : memref<2x384x96xbf16, #tpu.memory_space<vmem>>, vector<1x384x96xbf16>
    %11 = vector.shape_cast %10 : vector<1x384x96xbf16> to vector<384x96xbf16>
    %cst = arith.constant dense<0.000000e+00> : vector<32x96xf32>
    %12 = tpu.matmul %6, %11, %cst {dimension_numbers = #tpu.dot_dimension_numbers<[1], [0], [0], [1], [0, 0, 1, 1], [], []>} : vector<32x384xbf16>, vector<384x96xbf16>, vector<32x96xf32> -> vector<32x96xf32>
    %c1 = arith.constant 1 : index
    %c0_6 = arith.constant 0 : index
    %c0_7 = arith.constant 0 : index
    %13 = vector.load %arg3[%c1, %c0_6, %c0_7] : memref<2x384x96xbf16, #tpu.memory_space<vmem>>, vector<1x384x96xbf16>
    %14 = vector.shape_cast %13 : vector<1x384x96xbf16> to vector<384x96xbf16>
    %cst_8 = arith.constant dense<0.000000e+00> : vector<32x96xf32>
    %15 = tpu.matmul %9, %14, %cst_8 {dimension_numbers = #tpu.dot_dimension_numbers<[1], [0], [0], [1], [0, 0, 1, 1], [], []>} : vector<32x384xbf16>, vector<384x96xbf16>, vector<32x96xf32> -> vector<32x96xf32>
    %16 = arith.addf %12, %15 : vector<32x96xf32>
    %c0_9 = arith.constant 0 : index
    %c0_10 = arith.constant 0 : index
    %17 = vector.load %arg4[%c0_9, %c0_10] : memref<1x96xf32, #tpu.memory_space<vmem>>, vector<1x96xf32>
    %18 = vector.broadcast %17 : vector<1x96xf32> to vector<32x96xf32>
    %19 = arith.addf %16, %18 : vector<32x96xf32>
    %cst_11 = arith.constant 0.000000e+00 : f32
    %20 = vector.broadcast %cst_11 : f32 to vector<32x96xf32>
    %21 = arith.maximumf %19, %20 : vector<32x96xf32>
    %22 = arith.truncf %21 : vector<32x96xf32> to vector<32x96xbf16>
    %c0_12 = arith.constant 0 : index
    %c0_13 = arith.constant 0 : index
    %c0_14 = arith.constant 0 : index
    %23 = vector.load %arg5[%c0_12, %c0_13, %c0_14] : memref<1x32x96xbf16, #tpu.memory_space<vmem>>, vector<1x32x96xbf16>
    %24 = vector.shape_cast %23 : vector<1x32x96xbf16> to vector<32x96xbf16>
    %25 = vector.shape_cast %22 : vector<32x96xbf16> to vector<1x32x96xbf16>
    tpu.vector_store %arg5[%c0_12, %c0_13, %c0_14], %25 {strides = array<i32>} : memref<1x32x96xbf16, #tpu.memory_space<vmem>>, vector<1x32x96xbf16>,
    return
  }
  func.func @transform_0(%arg0: i32, %arg1: i32) -> (i32, i32, i32) {
    %c0_i32 = arith.constant 0 : i32
    %c0_i32_0 = arith.constant 0 : i32
    %c0_i32_1 = arith.constant 0 : i32
    return %arg0, %c0_i32, %c0_i32_0 : i32, i32, i32
  }
  func.func @transform_1(%arg0: i32, %arg1: i32) -> (i32, i32, i32) {
    %c0_i32 = arith.constant 0 : i32
    %c0_i32_0 = arith.constant 0 : i32
    %c0_i32_1 = arith.constant 0 : i32
    %c0_i32_2 = arith.constant 0 : i32
    return %c0_i32, %c0_i32_0, %c0_i32_1 : i32, i32, i32
  }
  func.func @transform_2(%arg0: i32, %arg1: i32) -> (i32, i32) {
    %c0_i32 = arith.constant 0 : i32
    %c0_i32_0 = arith.constant 0 : i32
    %c0_i32_1 = arith.constant 0 : i32
    return %c0_i32, %c0_i32_0 : i32, i32
  }
  func.func @transform_3(%arg0: i32, %arg1: i32) -> (i32, i32, i32) {
    %c0_i32 = arith.constant 0 : i32
    %c0_i32_0 = arith.constant 0 : i32
    return %arg0, %arg1, %c0_i32 : i32, i32, i32
  }
}

module attributes {stable_mosaic.version = 11 : i64} {
  func.func @_add_pos_kernel(%arg0: memref<2x128xbf16, #tpu.memory_space<vmem>>, %arg1: memref<1x128xf32, #tpu.memory_space<vmem>>, %arg2: memref<2x128xf32, #tpu.memory_space<vmem>>) attributes {dimension_semantics = [], scalar_prefetch = 0 : i64, scratch_operands = 0 : i64, tpu.core_type = #tpu.core_type<tc>} {
    %c0 = arith.constant 0 : index
    %c0_0 = arith.constant 0 : index
    %0 = vector.load %arg0[%c0, %c0_0] : memref<2x128xbf16, #tpu.memory_space<vmem>>, vector<2x128xbf16>
    %1 = arith.extf %0 : vector<2x128xbf16> to vector<2x128xf32>
    %c0_1 = arith.constant 0 : index
    %c0_2 = arith.constant 0 : index
    %2 = vector.load %arg1[%c0_1, %c0_2] : memref<1x128xf32, #tpu.memory_space<vmem>>, vector<1x128xf32>
    %3 = vector.broadcast %2 : vector<1x128xf32> to vector<2x128xf32>
    %4 = arith.addf %1, %3 : vector<2x128xf32>
    %c0_3 = arith.constant 0 : index
    %c0_4 = arith.constant 0 : index
    %5 = vector.load %arg2[%c0_3, %c0_4] : memref<2x128xf32, #tpu.memory_space<vmem>>, vector<2x128xf32>
    tpu.vector_store %arg2[%c0_3, %c0_4], %4 {strides = array<i32>} : memref<2x128xf32, #tpu.memory_space<vmem>>, vector<2x128xf32>,
    return
  }
}

module attributes {stable_mosaic.version = 11 : i64} {
  func.func @_conv_s2d_kernel(%arg0: i32, %arg1: i32, %arg2: memref<1x24x768xbf16, #tpu.memory_space<vmem>>, %arg3: memref<2x768x32xbf16, #tpu.memory_space<vmem>>, %arg4: memref<1x32xf32, #tpu.memory_space<vmem>>, %arg5: memref<1x16x32xbf16, #tpu.memory_space<vmem>>) attributes {dimension_semantics = [#tpu.dimension_semantics<parallel>, #tpu.dimension_semantics<parallel>], iteration_bounds = array<i64: 2, 1>, scalar_prefetch = 0 : i64, scratch_operands = 0 : i64, tpu.core_type = #tpu.core_type<tc>, window_params = [{transform_indices = @transform_0, window_bounds = array<i64: 1, 24, 768>}, {pipeline_mode = #tpu.pipeline_mode<synchronous>, transform_indices = @transform_1, window_bounds = array<i64: 2, 768, 32>}, {pipeline_mode = #tpu.pipeline_mode<synchronous>, transform_indices = @transform_2, window_bounds = array<i64: 1, 32>}, {transform_indices = @transform_3, window_bounds = array<i64: 1, 16, 32>}]} {
    %c16_i32 = arith.constant 16 : i32
    %0 = arith.muli %arg1, %c16_i32 : i32
    %1 = tpu.assume_multiple %0, 8 : i32
    %c8_i32 = arith.constant 8 : i32
    %2 = arith.addi %1, %c8_i32 : i32
    %3 = tpu.assume_multiple %2, 8 : i32
    %c0 = arith.constant 0 : index
    %4 = arith.index_cast %1 : i32 to index
    %c0_0 = arith.constant 0 : index
    %5 = vector.load %arg2[%c0, %4, %c0_0] : memref<1x24x768xbf16, #tpu.memory_space<vmem>>, vector<1x16x768xbf16>
    %6 = vector.shape_cast %5 : vector<1x16x768xbf16> to vector<16x768xbf16>
    %c0_1 = arith.constant 0 : index
    %7 = arith.index_cast %3 : i32 to index
    %c0_2 = arith.constant 0 : index
    %8 = vector.load %arg2[%c0_1, %7, %c0_2] : memref<1x24x768xbf16, #tpu.memory_space<vmem>>, vector<1x16x768xbf16>
    %9 = vector.shape_cast %8 : vector<1x16x768xbf16> to vector<16x768xbf16>
    %c0_3 = arith.constant 0 : index
    %c0_4 = arith.constant 0 : index
    %c0_5 = arith.constant 0 : index
    %10 = vector.load %arg3[%c0_3, %c0_4, %c0_5] : memref<2x768x32xbf16, #tpu.memory_space<vmem>>, vector<1x768x32xbf16>
    %11 = vector.shape_cast %10 : vector<1x768x32xbf16> to vector<768x32xbf16>
    %cst = arith.constant dense<0.000000e+00> : vector<16x32xf32>
    %12 = tpu.matmul %6, %11, %cst {dimension_numbers = #tpu.dot_dimension_numbers<[1], [0], [0], [1], [0, 0, 1, 1], [], []>} : vector<16x768xbf16>, vector<768x32xbf16>, vector<16x32xf32> -> vector<16x32xf32>
    %c1 = arith.constant 1 : index
    %c0_6 = arith.constant 0 : index
    %c0_7 = arith.constant 0 : index
    %13 = vector.load %arg3[%c1, %c0_6, %c0_7] : memref<2x768x32xbf16, #tpu.memory_space<vmem>>, vector<1x768x32xbf16>
    %14 = vector.shape_cast %13 : vector<1x768x32xbf16> to vector<768x32xbf16>
    %cst_8 = arith.constant dense<0.000000e+00> : vector<16x32xf32>
    %15 = tpu.matmul %9, %14, %cst_8 {dimension_numbers = #tpu.dot_dimension_numbers<[1], [0], [0], [1], [0, 0, 1, 1], [], []>} : vector<16x768xbf16>, vector<768x32xbf16>, vector<16x32xf32> -> vector<16x32xf32>
    %16 = arith.addf %12, %15 : vector<16x32xf32>
    %c0_9 = arith.constant 0 : index
    %c0_10 = arith.constant 0 : index
    %17 = vector.load %arg4[%c0_9, %c0_10] : memref<1x32xf32, #tpu.memory_space<vmem>>, vector<1x32xf32>
    %18 = vector.broadcast %17 : vector<1x32xf32> to vector<16x32xf32>
    %19 = arith.addf %16, %18 : vector<16x32xf32>
    %cst_11 = arith.constant 0.000000e+00 : f32
    %20 = vector.broadcast %cst_11 : f32 to vector<16x32xf32>
    %21 = arith.maximumf %19, %20 : vector<16x32xf32>
    %22 = arith.truncf %21 : vector<16x32xf32> to vector<16x32xbf16>
    %c0_12 = arith.constant 0 : index
    %c0_13 = arith.constant 0 : index
    %c0_14 = arith.constant 0 : index
    %23 = vector.load %arg5[%c0_12, %c0_13, %c0_14] : memref<1x16x32xbf16, #tpu.memory_space<vmem>>, vector<1x16x32xbf16>
    %24 = vector.shape_cast %23 : vector<1x16x32xbf16> to vector<16x32xbf16>
    %25 = vector.shape_cast %22 : vector<16x32xbf16> to vector<1x16x32xbf16>
    tpu.vector_store %arg5[%c0_12, %c0_13, %c0_14], %25 {strides = array<i32>} : memref<1x16x32xbf16, #tpu.memory_space<vmem>>, vector<1x16x32xbf16>,
    return
  }
  func.func @transform_0(%arg0: i32, %arg1: i32) -> (i32, i32, i32) {
    %c0_i32 = arith.constant 0 : i32
    %c0_i32_0 = arith.constant 0 : i32
    %c0_i32_1 = arith.constant 0 : i32
    return %arg0, %c0_i32, %c0_i32_0 : i32, i32, i32
  }
  func.func @transform_1(%arg0: i32, %arg1: i32) -> (i32, i32, i32) {
    %c0_i32 = arith.constant 0 : i32
    %c0_i32_0 = arith.constant 0 : i32
    %c0_i32_1 = arith.constant 0 : i32
    %c0_i32_2 = arith.constant 0 : i32
    return %c0_i32, %c0_i32_0, %c0_i32_1 : i32, i32, i32
  }
  func.func @transform_2(%arg0: i32, %arg1: i32) -> (i32, i32) {
    %c0_i32 = arith.constant 0 : i32
    %c0_i32_0 = arith.constant 0 : i32
    %c0_i32_1 = arith.constant 0 : i32
    return %c0_i32, %c0_i32_0 : i32, i32
  }
  func.func @transform_3(%arg0: i32, %arg1: i32) -> (i32, i32, i32) {
    %c0_i32 = arith.constant 0 : i32
    %c0_i32_0 = arith.constant 0 : i32
    return %arg0, %arg1, %c0_i32 : i32, i32, i32
  }
}

</mosaic_0001>

<bundles_post_ra>
// kernel: cnn_embedding1_forward.4
= control target key start
LH: loop header
LB: loop body
LE: loop exit
PB: predicated region body
PF: predicated region fallthrough
CT: control target
= control target key end

     0   :  { %s1063_s12 = smov 0   ;;  %s1065_s13 = smov 0   ;;  %s1201_s0 = inlined_call_operand.vmem [shape: bf16[2,144,24], index: 0, kind: input, shape index: {}]   ;;  %s1202_s1 = inlined_call_operand.vmem [shape: bf16[2,24,48], index: 1, kind: input, shape index: {}]   ;;  %s1203_s2 = inlined_call_operand.vmem [shape: f32[1,48], index: 2, kind: input, shape index: {}]   ;;  %s1204_s3 = inlined_call_operand.vmem [shape: bf16[2,128,48], index: 3, kind: output, shape index: {}]  }
   0x1   :  { %s1067_s14 = smov 0  }
   0x2 LB: > { %s25_s15 = sadd.s32 1, %s1037_s13  ;;  %p801_p0 = scmp.ge.s32.totalorder %s1041_s14, 1  ;;  %s1041_s14 = sphi %s1067_s14, %s13_s14   ;;  %s1037_s13 = sphi %s1065_s13, %s1206_s13   ;;  %s1033_s12 = sphi %s1063_s12, %s1205_s12  }
   0x3   : > { %p27_p1 = scmp.ge.s32.totalorder %s25_s15, 2  ;;  %p151_p2 = scmp.lt.s32.totalorder %s1041_s14, 3 }
   0x5   : > { %s1208_s15 = smov (%p27_p1, %s25_s15), 0  ;;  %p152_p3 = pnand %p801_p0, %p151_p2 }
   0x6   : > { %v999_v0 = vld [vmem:[%s1202_s1 + $0xc] sm:$0xff] (!%p152_p3)   ;;  %vm318_vm0 = vcmask (!%p152_p3), 1043456   ;;  %v1000_v1 = vld [vmem:[%s1202_s1] sm:$0xff] (!%p152_p3)   ;;  %p179_p4 = scmp.lt.s32.totalorder (!%p152_p3), %s1033_s12, 1  ;;  %v1001_v2 = vld [vmem:[%s1202_s1 + $0x14] ss:$0 sps:$4 sm:$0xff] (!%p152_p3)  }
   0x7   : > { %155 = sbr.rel (%p152_p3) target bundleno = 268 (0x10c), region = 32  ;;  %916 = vmatprep.subr.bf16.mxu1 (!%p152_p3), %v999_v0  ;;  %936 = vmatprep.subr.bf16.mxu0 (!%p152_p3), %v1000_v1  ;;  %v1002_v3 = vld [vmem:[%s1202_s1 + $0x8] ss:$0 sps:$4 sm:$0xff] (!%p152_p3)   ;;  %v320_v4 = vsel (!%p152_p3), %vm318_vm0, %v1001_v2, 0  ;;  %vm293_vm1 = vcmask (!%p152_p3), 195584   ;;  %vm695_vm2 = vcmask (!%p152_p3), 388096  }
   0x8   : > { %917 = vmatpush3.bf16.msra.mxu1 (!%p152_p3), %v999_v0  ;;  %937 = vmatpush3.bf16.msra.mxu0 (!%p152_p3), %v1000_v1  ;;  %v493_v5 = vsel (!%p152_p3), %vm318_vm0, %v1002_v3, 0  ;;  %v1136_v24 = vld [vmem:[%s1203_s2] ss:$0 sm:$0xff] (!%p152_p3) }
   0x9   : > { %972 = vmatprep.subr.msk.bf16.mxu1 (!%p152_p3), %vm318_vm0, %v1001_v2  ;;  %973 = vmatprep.subr.msk.bf16.mxu0 (!%p152_p3), %vm318_vm0, %v1002_v3 }
   0xc   : > { %919 = vmatpush3.bf16.msra.mxu1 (!%p152_p3), %v320_v4  ;;  %939 = vmatpush3.bf16.msra.mxu0 (!%p152_p3), %v493_v5 }
   0xe   : > { %s1210_s12 = smov (!%p179_p4, %s1033_s12), 1 }
   0xf   : > { %s974_s24 = smul.u32 72, %s1210_s12  ;;  %s879_s30 = sshll.u32 %s1210_s12, 6 }
  0x10   : > { %s1145_s6 = scalar_lea.vmem %s1204_s3, %s879_s30 }
  0x11   : > { %s1099_s27 = scalar_lea.vmem %s1201_s0, %s974_s24 }
  0x12   : > { %v1003_v6 = vld [vmem:[%s1099_s27 + $0x8] sm:$0xff]   ;;  %v1004_v7 = vld [vmem:[%s1099_s27] sm:$0xff]   ;;  %v1005_v8 = vld [vmem:[%s1099_s27 + $0x10] sm:$0xff]  }
  0x13   : > { %920 = vmatprep.mubr.msk.bf16.mxu1 %vm293_vm1, %v1003_v6  ;;  %940 = vmatprep.mubr.msk.bf16.mxu0 %vm293_vm1, %v1004_v7  ;;  %v1006_v9 = vld [vmem:[%s1099_s27 + $0x8] sm:$0xff]   ;;  %v1007_v10 = vld [vmem:[%s1099_s27 + $0x18] sm:$0xff]   ;;  %v1008_v11 = vld [vmem:[%s1099_s27 + $0x10] sm:$0xff]  }
  0x14   : > { %921 = vmatmul.mubr.msk.bf16.vlgmr.msra.gmra.mrb[0].mxu1 %vm293_vm1, %v1005_v8  ;;  %941 = vmatmul.mubr.msk.bf16.vlgmr.msra.gmra.mrb[0].mxu0 %vm293_vm1, %v1006_v9  ;;  %v1009_v12 = vld [vmem:[%s1099_s27 + $0x20] sm:$0xff]   ;;  %v1010_v13 = vld [vmem:[%s1099_s27 + $0x18] sm:$0xff]   ;;  %v1011_v14 = vld [vmem:[%s1099_s27 + $0x28] sm:$0xff]  }
  0x15   : > { %924 = vmatprep.mubr.msk.bf16.mxu1 %vm293_vm1, %v1007_v10  ;;  %944 = vmatprep.mubr.msk.bf16.mxu0 %vm293_vm1, %v1008_v11  ;;  %v1012_v15 = vld [vmem:[%s1099_s27 + $0x20] sm:$0xff]   ;;  %v1013_v16 = vld [vmem:[%s1099_s27 + $0x30] sm:$0xff]   ;;  %v1014_v17 = vld [vmem:[%s1099_s27 + $0x28] sm:$0xff]  }
  0x16   : > { %v1015_v18 = vld [vmem:[%s1099_s27 + $0x38] sm:$0xff]   ;;  %v1016_v19 = vld [vmem:[%s1099_s27 + $0x30] sm:$0xff]   ;;  %v1017_v20 = vld [vmem:[%s1099_s27 + $0x40] sm:$0xff]  }
  0x17   : > { %v1018_v21 = vld [vmem:[%s1099_s27 + $0x38] sm:$0xff]  }
  0x1c   : > { %925 = vmatmul.mubr.msk.bf16.gmra.mrb[4].mxu1 %vm293_vm1, %v1009_v12  ;;  %945 = vmatmul.mubr.msk.bf16.gmra.mrb[4].mxu0 %vm293_vm1, %v1010_v13 }
  0x1d   : > { %928 = vmatprep.mubr.msk.bf16.mxu1 %vm293_vm1, %v1011_v14  ;;  %948 = vmatprep.mubr.msk.bf16.mxu0 %vm293_vm1, %v1012_v15 }
  0x24   : > { %929 = vmatmul.mubr.msk.bf16.gmra.mrb[8].mxu1 %vm293_vm1, %v1013_v16  ;;  %949 = vmatmul.mubr.msk.bf16.gmra.mrb[8].mxu0 %vm293_vm1, %v1014_v17 }
  0x25   : > { %932 = vmatprep.mubr.msk.bf16.mxu1 %vm293_vm1, %v1015_v18  ;;  %952 = vmatprep.mubr.msk.bf16.mxu0 %vm293_vm1, %v1016_v19 }
  0x2c   : > { %933 = vmatmul.mubr.msk.bf16.gmra.mrb[12].mxu1 %vm293_vm1, %v1017_v20  ;;  %953 = vmatmul.mubr.msk.bf16.gmra.mrb[12].mxu0 %vm293_vm1, %v1018_v21 }
  0xe7   : > { %v922_v22 = vpop.f32.mrb[0].mxu1  ;;  %v942_v23 = vpop.f32.mrb[0].mxu0 }
  0xe8   : > { %v356_v25 = vpop.f32.mrb[1].mxu1  ;;  %v538_v26 = vadd.f32 %v942_v23, %v922_v22  ;;  %v529_v27 = vpop.f32.mrb[1].mxu0 }
  0xe9   : > { %v923_v28 = vpop.f32.mrb[2].mxu1  ;;  %v530_v29 = vadd.f32 %v529_v27, %v356_v25  ;;  %v943_v30 = vpop.f32.mrb[2].mxu0 }
  0xea   : > { %v359_v31 = vpop.f32.mrb[3].mxu1  ;;  %v601_v32 = vadd.f32 %v1136_v24, %v538_v26  ;;  %v541_v33 = vadd.f32 %v943_v30, %v923_v28  ;;  %v532_v34 = vpop.f32.mrb[3].mxu0 }
  0xeb   : > { %v599_v35 = vadd.f32 %v1136_v24, %v530_v29  ;;  %v533_v36 = vadd.f32 %v532_v34, %v359_v31 }
  0xec   : > { %v617_v37 = vmax.f32 %v601_v32, 0.0  ;;  %v602_v38 = vadd.f32 %v1136_v24, %v541_v33 }
  0xed   : > { %v615_v39 = vmax.f32 %v599_v35, 0.0  ;;  %v600_v40 = vadd.f32 %v1136_v24, %v533_v36 }
  0xee   : > { %v882_v41 = vpack.c.bf16 %v617_v37, %v617_v37  ;;  %v618_v42 = vmax.f32 %v602_v38, 0.0 }
  0xef   : > { %v926_v43 = vpop.f32.mrb[4].mxu1  ;;  %v880_v44 = vpack.c.bf16 %v615_v39, %v615_v39  ;;  %v616_v45 = vmax.f32 %v600_v40, 0.0  ;;  %v946_v46 = vpop.f32.mrb[4].mxu0 }
  0xf0   : > { %v372_v47 = vpop.f32.mrb[5].mxu1  ;;  %698 = vst.msk [vmem:[%s1145_s6 + $0x8] sm:$0xf] %vm695_vm2, %v882_v41  ;;  %v883_v48 = vpack.c.bf16 %v618_v42, %v618_v42  ;;  %v554_v49 = vadd.f32 %v946_v46, %v926_v43  ;;  %v545_v50 = vpop.f32.mrb[5].mxu0 }
  0xf1   : > { %v927_v51 = vpop.f32.mrb[6].mxu1  ;;  %696 = vst.msk [vmem:[%s1145_s6] sm:$0xf] %vm695_vm2, %v880_v44  ;;  %v881_v52 = vpack.c.bf16 %v616_v45, %v616_v45  ;;  %v546_v53 = vadd.f32 %v545_v50, %v372_v47  ;;  %v947_v54 = vpop.f32.mrb[6].mxu0 }
  0xf2   : > { %v375_v55 = vpop.f32.mrb[7].mxu1  ;;  %699 = vst.msk [vmem:[%s1145_s6 + $0xc] sm:$0xf] %vm695_vm2, %v883_v48  ;;  %v605_v56 = vadd.f32 %v1136_v24, %v554_v49  ;;  %v557_v57 = vadd.f32 %v947_v54, %v927_v51  ;;  %v548_v58 = vpop.f32.mrb[7].mxu0 }
  0xf3   : > { %697 = vst.msk [vmem:[%s1145_s6 + $0x4] sm:$0xf] %vm695_vm2, %v881_v52  ;;  %v603_v59 = vadd.f32 %v1136_v24, %v546_v53  ;;  %v549_v60 = vadd.f32 %v548_v58, %v375_v55 }
  0xf4   : > { %v621_v61 = vmax.f32 %v605_v56, 0.0  ;;  %v606_v62 = vadd.f32 %v1136_v24, %v557_v57 }
  0xf5   : > { %v619_v63 = vmax.f32 %v603_v59, 0.0  ;;  %v604_v0 = vadd.f32 %v1136_v24, %v549_v60 }
  0xf6   : > { %v886_v1 = vpack.c.bf16 %v621_v61, %v621_v61  ;;  %v622_v2 = vmax.f32 %v606_v62, 0.0 }
  0xf7   : > { %v930_v3 = vpop.f32.mrb[8].mxu1  ;;  %v884_v4 = vpack.c.bf16 %v619_v63, %v619_v63  ;;  %v620_v5 = vmax.f32 %v604_v0, 0.0  ;;  %v950_v6 = vpop.f32.mrb[8].mxu0 }
  0xf8   : > { %v388_v7 = vpop.f32.mrb[9].mxu1  ;;  %702 = vst.msk [vmem:[%s1145_s6 + $0x18] sm:$0xf] %vm695_vm2, %v886_v1  ;;  %v887_v8 = vpack.c.bf16 %v622_v2, %v622_v2  ;;  %v570_v9 = vadd.f32 %v950_v6, %v930_v3  ;;  %v561_v10 = vpop.f32.mrb[9].mxu0 }
  0xf9   : > { %v931_v11 = vpop.f32.mrb[10].mxu1  ;;  %700 = vst.msk [vmem:[%s1145_s6 + $0x10] sm:$0xf] %vm695_vm2, %v884_v4  ;;  %v885_v12 = vpack.c.bf16 %v620_v5, %v620_v5  ;;  %v562_v13 = vadd.f32 %v561_v10, %v388_v7  ;;  %v951_v14 = vpop.f32.mrb[10].mxu0 }
  0xfa   : > { %v391_v15 = vpop.f32.mrb[11].mxu1  ;;  %703 = vst.msk [vmem:[%s1145_s6 + $0x1c] sm:$0xf] %vm695_vm2, %v887_v8  ;;  %v609_v16 = vadd.f32 %v1136_v24, %v570_v9  ;;  %v573_v17 = vadd.f32 %v951_v14, %v931_v11  ;;  %v564_v18 = vpop.f32.mrb[11].mxu0 }
  0xfb   : > { %701 = vst.msk [vmem:[%s1145_s6 + $0x14] sm:$0xf] %vm695_vm2, %v885_v12  ;;  %v607_v19 = vadd.f32 %v1136_v24, %v562_v13  ;;  %v565_v20 = vadd.f32 %v564_v18, %v391_v15 }
  0xfc   : > { %v625_v21 = vmax.f32 %v609_v16, 0.0  ;;  %v610_v22 = vadd.f32 %v1136_v24, %v573_v17 }
  0xfd   : > { %v623_v23 = vmax.f32 %v607_v19, 0.0  ;;  %v608_v25 = vadd.f32 %v1136_v24, %v565_v20 }
  0xfe   : > { %v890_v26 = vpack.c.bf16 %v625_v21, %v625_v21  ;;  %v626_v27 = vmax.f32 %v610_v22, 0.0 }
  0xff   : > { %v934_v28 = vpop.f32.mrb[12].mxu1  ;;  %v888_v29 = vpack.c.bf16 %v623_v23, %v623_v23  ;;  %v624_v30 = vmax.f32 %v608_v25, 0.0  ;;  %v954_v31 = vpop.f32.mrb[12].mxu0 }
 0x100   : > { %v404_v32 = vpop.f32.mrb[13].mxu1  ;;  %706 = vst.msk [vmem:[%s1145_s6 + $0x28] sm:$0xf] %vm695_vm2, %v890_v26  ;;  %v891_v33 = vpack.c.bf16 %v626_v27, %v626_v27  ;;  %v586_v34 = vadd.f32 %v954_v31, %v934_v28  ;;  %v577_v35 = vpop.f32.mrb[13].mxu0 }
 0x101   : > { %v935_v36 = vpop.f32.mrb[14].mxu1  ;;  %704 = vst.msk [vmem:[%s1145_s6 + $0x20] sm:$0xf] %vm695_vm2, %v888_v29  ;;  %v889_v37 = vpack.c.bf16 %v624_v30, %v624_v30  ;;  %v578_v38 = vadd.f32 %v577_v35, %v404_v32  ;;  %v955_v39 = vpop.f32.mrb[14].mxu0 }
 0x102   : > { %v407_v40 = vpop.f32.mrb[15].mxu1  ;;  %707 = vst.msk [vmem:[%s1145_s6 + $0x2c] sm:$0xf] %vm695_vm2, %v891_v33  ;;  %v613_v41 = vadd.f32 %v1136_v24, %v586_v34  ;;  %v589_v42 = vadd.f32 %v955_v39, %v935_v36  ;;  %v580_v43 = vpop.f32.mrb[15].mxu0 }
 0x103   : > { %705 = vst.msk [vmem:[%s1145_s6 + $0x24] sm:$0xf] %vm695_vm2, %v889_v37  ;;  %v611_v44 = vadd.f32 %v1136_v24, %v578_v38  ;;  %v581_v45 = vadd.f32 %v580_v43, %v407_v40 }
 0x104   : > { %v629_v46 = vmax.f32 %v613_v41, 0.0  ;;  %v614_v47 = vadd.f32 %v1136_v24, %v589_v42 }
 0x105   : > { %v627_v48 = vmax.f32 %v611_v44, 0.0  ;;  %v612_v49 = vadd.f32 %v1136_v24, %v581_v45 }
 0x106   : > { %v894_v50 = vpack.c.bf16 %v629_v46, %v629_v46  ;;  %v630_v51 = vmax.f32 %v614_v47, 0.0 }
 0x107   : > { %v892_v52 = vpack.c.bf16 %v627_v48, %v627_v48  ;;  %v628_v53 = vmax.f32 %v612_v49, 0.0 }
 0x108   : > { %710 = vst.msk [vmem:[%s1145_s6 + $0x38] sm:$0xf] %vm695_vm2, %v894_v50  ;;  %v895_v54 = vpack.c.bf16 %v630_v51, %v630_v51 }
 0x109   : > { %708 = vst.msk [vmem:[%s1145_s6 + $0x30] sm:$0xf] %vm695_vm2, %v892_v52  ;;  %v893_v55 = vpack.c.bf16 %v628_v53, %v628_v53 }
 0x10a   : > { %711 = vst.msk [vmem:[%s1145_s6 + $0x3c] sm:$0xf] %vm695_vm2, %v895_v54 }
 0x10b   : > { %709 = vst.msk [vmem:[%s1145_s6 + $0x34] sm:$0xf] %vm695_vm2, %v893_v55 }
 0x10c PF: > { %s13_s14 = sadd.s32 1, %s1041_s14   ;;  %s1205_s12 = smov %s1037_s13 }
 0x10d   : > { %p10_p5 = scmp.ge.s32.totalorder %s13_s14, 4   ;;  %s1206_s13 = smov %s1208_s15 }
 0x10f   :  { %12 = sbr.rel (!%p10_p5) target bundleno = 2 (0x2), region = 65 }

// kernel: cnn_embedding1_forward.5
= control target key start
LH: loop header
LB: loop body
LE: loop exit
PB: predicated region body
PF: predicated region fallthrough
CT: control target
= control target key end

     0   :  { %s1382_s12 = smov 0   ;;  %s1384_s13 = smov 0   ;;  %s1597_s0 = inlined_call_operand.vmem [shape: bf16[2,40,384], index: 0, kind: input, shape index: {}]   ;;  %s1598_s1 = inlined_call_operand.vmem [shape: bf16[2,384,96], index: 1, kind: input, shape index: {}]   ;;  %s1599_s2 = inlined_call_operand.vmem [shape: f32[1,96], index: 2, kind: input, shape index: {}]   ;;  %s1600_s3 = inlined_call_operand.vmem [shape: bf16[2,32,96], index: 3, kind: output, shape index: {}]  }
   0x1   :  { %s1386_s14 = smov 0  }
   0x2 LB: > { %s25_s15 = sadd.s32 1, %s1356_s13  ;;  %p993_p0 = scmp.ge.s32.totalorder %s1360_s14, 1  ;;  %s1360_s14 = sphi %s1386_s14, %s13_s14   ;;  %s1356_s13 = sphi %s1384_s13, %s1602_s13   ;;  %s1352_s12 = sphi %s1382_s12, %s1601_s12  }
   0x3   : > { %p27_p1 = scmp.ge.s32.totalorder %s25_s15, 2  ;;  %p151_p2 = scmp.lt.s32.totalorder %s1360_s14, 3 }
   0x5   : > { %s1604_s15 = smov (%p27_p1, %s25_s15), 0  ;;  %p152_p3 = pnand %p993_p0, %p151_p2 }
   0x6   : > { %v1278_v0 = vld [vmem:[%s1598_s1 + $0x100] sm:$0xff] (!%p152_p3)   ;;  %v1281_v3 = vld [vmem:[%s1598_s1 + $0x108] sm:$0xff] (!%p152_p3)   ;;  %v1284_v6 = vld [vmem:[%s1598_s1 + $0x110] sm:$0xff] (!%p152_p3)   ;;  %p179_p4 = scmp.lt.s32.totalorder (!%p152_p3), %s1352_s12, 1  ;;  %vm899_vm0 = vcmask (!%p152_p3), 781312  }
   0x7   : > { %155 = sbr.rel (%p152_p3) target bundleno = 308 (0x134), region = 32  ;;  %v1279_v1 = vld [vmem:[%s1598_s1 + $0x140] sm:$0xff] (!%p152_p3)   ;;  %1125 = vmatprep.subr.bf16.mxu0 (!%p152_p3), %v1278_v0  ;;  %v1282_v4 = vld [vmem:[%s1598_s1 + $0x148] sm:$0xff] (!%p152_p3)   ;;  %v1285_v7 = vld [vmem:[%s1598_s1 + $0x150] sm:$0xff] (!%p152_p3)  }
   0x8   : > { %v1280_v2 = vld [vmem:[%s1598_s1 + $0xc0] sm:$0xff] (!%p152_p3)   ;;  %1201 = vmatprep.subr.bf16.mxu1 (!%p152_p3), %v1279_v1  ;;  %v1283_v5 = vld [vmem:[%s1598_s1 + $0xc8] sm:$0xff] (!%p152_p3)   ;;  %v1286_v8 = vld [vmem:[%s1598_s1 + $0xd0] sm:$0xff] (!%p152_p3)  }
   0x9   : > { %1126 = vmatpush3.bf16.msra.mxu0 (!%p152_p3), %v1280_v2  ;;  %1202 = vmatpush3.bf16.msra.mxu1 (!%p152_p3), %v1279_v1  ;;  %v1287_v9 = vld [vmem:[%s1598_s1 + $0x118] sm:$0xff] (!%p152_p3)   ;;  %v1290_v12 = vld [vmem:[%s1598_s1 + $0x120] sm:$0xff] (!%p152_p3)   ;;  %v1293_v15 = vld [vmem:[%s1598_s1 + $0x128] sm:$0xff] (!%p152_p3)  }
   0xa   : > { %1127 = vmatprep.subr.bf16.mxu0 (!%p152_p3), %v1281_v3  ;;  %1203 = vmatprep.subr.bf16.mxu1 (!%p152_p3), %v1282_v4  ;;  %v1288_v10 = vld [vmem:[%s1598_s1 + $0x158] sm:$0xff] (!%p152_p3)   ;;  %v1291_v13 = vld [vmem:[%s1598_s1 + $0x160] sm:$0xff] (!%p152_p3)   ;;  %v1294_v16 = vld [vmem:[%s1598_s1 + $0x168] sm:$0xff] (!%p152_p3)  }
   0xb   : > { %v1289_v11 = vld [vmem:[%s1598_s1 + $0xd8] sm:$0xff] (!%p152_p3)   ;;  %v1292_v14 = vld [vmem:[%s1598_s1 + $0xe0] sm:$0xff] (!%p152_p3)   ;;  %v1295_v17 = vld [vmem:[%s1598_s1 + $0xe8] sm:$0xff] (!%p152_p3)  }
   0xc   : > { %v1296_v18 = vld [vmem:[%s1598_s1 + $0x130] sm:$0xff] (!%p152_p3)   ;;  %v1299_v21 = vld [vmem:[%s1598_s1 + $0x138] sm:$0xff] (!%p152_p3)   ;;  %v1305_v28 = vld [vmem:[%s1598_s1 + $0x40] sm:$0xff] (!%p152_p3)  }
   0xd   : > { %1128 = vmatpush3.bf16.msra.mxu0 (!%p152_p3), %v1283_v5  ;;  %1204 = vmatpush3.bf16.msra.mxu1 (!%p152_p3), %v1282_v4  ;;  %v1297_v19 = vld [vmem:[%s1598_s1 + $0x170] sm:$0xff] (!%p152_p3)   ;;  %v1300_v22 = vld [vmem:[%s1598_s1 + $0x178] sm:$0xff] (!%p152_p3)   ;;  %v1306_v29 = vld [vmem:[%s1598_s1 + $0x80] sm:$0xff] (!%p152_p3)  }
   0xe   : > { %1129 = vmatprep.subr.bf16.mxu0 %v1284_v6  ;;  %1205 = vmatprep.subr.bf16.mxu1 %v1285_v7  ;;  %s1606_s12 = smov (!%p179_p4, %s1352_s12), 1  ;;  %v1298_v20 = vld [vmem:[%s1598_s1 + $0xf0] sm:$0xff]   ;;  %v1301_v27 = vld [vmem:[%s1598_s1 + $0xf8] sm:$0xff]   ;;  %v1308_v32 = vld [vmem:[%s1598_s1] sm:$0xff]  }
   0xf   : > { %s1253_s27 = smul.u32 60, %s1606_s12  ;;  %v1309_v33 = vld [vmem:[%s1598_s1 + $0x48] sm:$0xff]   ;;  %v1312_v36 = vld [vmem:[%s1598_s1 + $0x50] sm:$0xff]   ;;  %v1315_v39 = vld [vmem:[%s1598_s1 + $0x58] sm:$0xff]  }
  0x10   : > { %v1310_v34 = vld [vmem:[%s1598_s1 + $0x88] sm:$0xff]   ;;  %v1313_v37 = vld [vmem:[%s1598_s1 + $0x90] sm:$0xff]   ;;  %v1316_v40 = vld [vmem:[%s1598_s1 + $0x98] sm:$0xff]  }
  0x11   : > { %1130 = vmatpush3.bf16.msra.mxu0 %v1286_v8  ;;  %1206 = vmatpush3.bf16.msra.mxu1 %v1285_v7  ;;  %s1470_s9 = scalar_lea.vmem %s1597_s0, %s1253_s27  ;;  %v1311_v35 = vld [vmem:[%s1598_s1 + $0x8] sm:$0xff]   ;;  %v1314_v38 = vld [vmem:[%s1598_s1 + $0x10] sm:$0xff]   ;;  %v1317_v43 = vld [vmem:[%s1598_s1 + $0x18] sm:$0xff]   ;;  %s1120_s27 = sshll.u32 %s1606_s12, 4 }
  0x12   : > { %1131 = vmatprep.subr.bf16.mxu0 %v1287_v9  ;;  %1207 = vmatprep.subr.bf16.mxu1 %v1288_v10  ;;  %v1482_v23 = vld [vmem:[%s1470_s9 + $0xc] sm:$0xff]  ;;  %v1485_v24 = vld [vmem:[%s1470_s9 + $0x18] sm:$0xff]  ;;  %v1304_v26 = vld [vmem:[%s1470_s9 + $0x14] ss:$12 sps:$4 sm:$0xff]   ;;  %s192_s30 = scalar_lea.vmem %s1600_s3, %s1120_s27 }
  0x13   : > { %v1054_v25 = vcombine.high %v1482_v23, %v1485_v24  ;;  %1217 = vmatprep.mubr.bf16.mxu1 %v1304_v26  ;;  %v1307_v30 = vld [vmem:[%s1470_s9 + $0x2c] ss:$12 sps:$4 sm:$0xff]   ;;  %v1053_v31 = vcombine.low %v1482_v23, %v1485_v24  ;;  %v1001_v41 = vld [vmem:[%s1470_s9 + $0x24] sm:$0xff]  ;;  %v1003_v42 = vld [vmem:[%s1470_s9 + $0x30] sm:$0xff] }
  0x14   : > { %v1057_v44 = vcombine.high %v1001_v41, %v1003_v42  ;;  %v1056_v45 = vcombine.low %v1001_v41, %v1003_v42  ;;  %v1318_v46 = vld [vmem:[%s1598_s1 + $0x60] sm:$0xff]   ;;  %v1322_v49 = vld [vmem:[%s1598_s1 + $0x68] sm:$0xff]   ;;  %v1326_v55 = vld [vmem:[%s1598_s1 + $0x70] sm:$0xff]   ;;  %v1087_v63 = vcombine.high %v1485_v24, %v1001_v41  ;;  %v1086_v0 = vcombine.low %v1485_v24, %v1001_v41 }
  0x15   : > { %1132 = vmatpush3.bf16.msra.mxu0 %v1289_v11  ;;  %1208 = vmatpush3.bf16.msra.mxu1 %v1288_v10  ;;  %v1319_v47 = vld [vmem:[%s1598_s1 + $0xa0] sm:$0xff]   ;;  %v1323_v50 = vld [vmem:[%s1598_s1 + $0xa8] sm:$0xff]   ;;  %v1327_v56 = vld [vmem:[%s1598_s1 + $0xb0] sm:$0xff]  }
  0x16   : > { %1133 = vmatprep.subr.bf16.mxu0 %v1290_v12  ;;  %1209 = vmatprep.subr.bf16.mxu1 %v1291_v13  ;;  %v1320_v48 = vld [vmem:[%s1598_s1 + $0x20] sm:$0xff]   ;;  %v1325_v51 = vld [vmem:[%s1598_s1 + $0x28] sm:$0xff]   ;;  %v1328_v57 = vld [vmem:[%s1598_s1 + $0x30] sm:$0xff]  }
  0x17   : > { %528 = vmatprep.mubr.bf16.mxu0 %v1054_v25  ;;  %v202_v52 = vld [vmem:[%s1470_s9] sm:$0xff]  ;;  %v1334_v54 = vld [vmem:[%s1470_s9 + $0x8] ss:$12 sps:$4 sm:$0xff]   ;;  %v1329_v58 = vld [vmem:[%s1598_s1 + $0x78] sm:$0xff]  }
  0x18   : > { %v1084_v53 = vcombine.high %v202_v52, %v1482_v23  ;;  %v1330_v59 = vld [vmem:[%s1598_s1 + $0xb8] sm:$0xff]   ;;  %v1083_v61 = vcombine.low %v202_v52, %v1482_v23  ;;  %v1335_v62 = vld [vmem:[%s1470_s9 + $0x20] ss:$12 sps:$4 sm:$0xff]  }
  0x19   : > { %1134 = vmatpush3.bf16.msra.mxu0 %v1292_v14  ;;  %1210 = vmatpush3.bf16.msra.mxu1 %v1291_v13  ;;  %v1331_v60 = vld [vmem:[%s1598_s1 + $0x38] sm:$0xff]   ;;  %v1113_v24 = vld [vmem:[%s1599_s2] ss:$0 sm:$0xff] }
  0x1a   : > { %1135 = vmatprep.subr.bf16.mxu0 %v1293_v15  ;;  %1211 = vmatprep.subr.bf16.mxu1 %v1294_v16 }
  0x1d   : > { %1136 = vmatpush3.bf16.msra.mxu0 %v1295_v17  ;;  %1212 = vmatpush3.bf16.msra.mxu1 %v1294_v16 }
  0x1e   : > { %1137 = vmatprep.subr.bf16.mxu0 %v1296_v18  ;;  %1213 = vmatprep.subr.bf16.mxu1 %v1297_v19 }
  0x21   : > { %1138 = vmatpush3.bf16.msra.mxu0 %v1298_v20  ;;  %1214 = vmatpush3.bf16.msra.mxu1 %v1297_v19 }
  0x22   : > { %1139 = vmatprep.subr.bf16.mxu0 %v1299_v21  ;;  %1215 = vmatprep.subr.bf16.mxu1 %v1300_v22 }
  0x25   : > { %1140 = vmatpush3.bf16.msra.mxu0 %v1301_v27  ;;  %1216 = vmatpush3.bf16.msra.mxu1 %v1300_v22 }
  0x26   : > { %1163 = vmatprep.subr.bf16.mxu0 %v1305_v28  ;;  %1221 = vmatprep.subr.bf16.mxu1 %v1306_v29 }
  0x28   : > { %529 = vmatmul.mubr.bf16.vlgmr.msra.gmra.mrb[0].mxu0 %v1053_v31  ;;  %1218 = vmatmul.mubr.bf16.vlgmr.msra.gmra.mrb[0].mxu1 %v1307_v30 }
  0x29   : > { %1164 = vmatpush3.bf16.msra.mxu0 %v1308_v32  ;;  %1222 = vmatpush3.bf16.msra.mxu1 %v1306_v29 }
  0x2a   : > { %1165 = vmatprep.subr.bf16.mxu0 %v1309_v33  ;;  %1223 = vmatprep.subr.bf16.mxu1 %v1310_v34 }
  0x2b   : > { %536 = vmatprep.mubr.bf16.mxu0 %v1057_v44  ;;  %1237 = vmatprep.mubr.bf16.mxu1 %v1334_v54 }
  0x2d   : > { %1166 = vmatpush3.bf16.msra.mxu0 %v1311_v35  ;;  %1224 = vmatpush3.bf16.msra.mxu1 %v1310_v34 }
  0x2e   : > { %1167 = vmatprep.subr.bf16.mxu0 %v1312_v36  ;;  %1225 = vmatprep.subr.bf16.mxu1 %v1313_v37 }
  0x30   : > { %537 = vmatmul.mubr.bf16.gmra.mrb[4].mxu0 %v1056_v45 }
  0x31   : > { %1168 = vmatpush3.bf16.msra.mxu0 %v1314_v38  ;;  %1226 = vmatpush3.bf16.msra.mxu1 %v1313_v37 }
  0x32   : > { %1169 = vmatprep.subr.bf16.mxu0 %v1315_v39  ;;  %1227 = vmatprep.subr.bf16.mxu1 %v1316_v40 }
  0x33   : > { %802 = vmatprep.mubr.bf16.mxu0 %v1084_v53 }
  0x35   : > { %1170 = vmatpush3.bf16.msra.mxu0 %v1317_v43  ;;  %1228 = vmatpush3.bf16.msra.mxu1 %v1316_v40 }
  0x36   : > { %1171 = vmatprep.subr.bf16.mxu0 %v1318_v46  ;;  %1229 = vmatprep.subr.bf16.mxu1 %v1319_v47 }
  0x39   : > { %1172 = vmatpush3.bf16.msra.mxu0 %v1320_v48  ;;  %1230 = vmatpush3.bf16.msra.mxu1 %v1319_v47 }
  0x3a   : > { %1173 = vmatprep.subr.bf16.mxu0 %v1322_v49  ;;  %1231 = vmatprep.subr.bf16.mxu1 %v1323_v50 }
  0x3d   : > { %1174 = vmatpush3.bf16.msra.mxu0 %v1325_v51  ;;  %1232 = vmatpush3.bf16.msra.mxu1 %v1323_v50 }
  0x3e   : > { %1175 = vmatprep.subr.bf16.mxu0 %v1326_v55  ;;  %1233 = vmatprep.subr.bf16.mxu1 %v1327_v56 }
  0x41   : > { %1176 = vmatpush3.bf16.msra.mxu0 %v1328_v57  ;;  %1234 = vmatpush3.bf16.msra.mxu1 %v1327_v56 }
  0x42   : > { %1177 = vmatprep.subr.bf16.mxu0 %v1329_v58  ;;  %1235 = vmatprep.subr.bf16.mxu1 %v1330_v59 }
  0x45   : > { %1178 = vmatpush3.bf16.msra.mxu0 %v1331_v60  ;;  %1236 = vmatpush3.bf16.msra.mxu1 %v1330_v59 }
  0x48   : > { %803 = vmatmul.mubr.bf16.vlgmr.msra.gmra.mrb[8].mxu0 %v1083_v61  ;;  %1238 = vmatmul.mubr.bf16.vlgmr.msra.gmra.mrb[0].mxu1 %v1335_v62 }
  0x49   : > { %810 = vmatprep.mubr.bf16.mxu0 %v1087_v63 }
  0x50   : > { %811 = vmatmul.mubr.bf16.gmra.mrb[12].mxu0 %v1086_v0 }
  0xfb   : > { %v1141_v1 = vpop.f32.mrb[0].mxu0 }
  0xfc   : > { %v1142_v2 = vpop.f32.mrb[1].mxu0 }
  0xfd   : > { %v1143_v3 = vadd.f32 %v1142_v2, %v1141_v1  ;;  %v1144_v4 = vpop.f32.mrb[2].mxu0 }
  0xfe   : > { %v1145_v5 = vpop.f32.mrb[3].mxu0 }
  0xff   : > { %v1146_v6 = vadd.f32 %v1145_v5, %v1144_v4 }
 0x103   : > { %v1147_v7 = vpop.f32.mrb[4].mxu0 }
 0x104   : > { %v1148_v8 = vpop.f32.mrb[5].mxu0 }
 0x105   : > { %v1149_v9 = vadd.f32 %v1148_v8, %v1147_v7  ;;  %v1150_v10 = vpop.f32.mrb[6].mxu0 }
 0x106   : > { %v1151_v11 = vpop.f32.mrb[7].mxu0 }
 0x107   : > { %v1152_v12 = vadd.f32 %v1151_v11, %v1150_v10 }
 0x11b   : > { %v1179_v13 = vpop.f32.mrb[8].mxu0  ;;  %v1239_v14 = vpop.f32.mrb[0].mxu1 }
 0x11c   : > { %v1180_v15 = vpop.f32.mrb[9].mxu0  ;;  %v853_v16 = vpop.f32.mrb[1].mxu1 }
 0x11d   : > { %v1181_v17 = vadd.f32 %v1180_v15, %v1179_v13  ;;  %v1182_v18 = vpop.f32.mrb[10].mxu0  ;;  %v1240_v19 = vpop.f32.mrb[2].mxu1 }
 0x11e   : > { %v1183_v20 = vpop.f32.mrb[11].mxu0  ;;  %v856_v21 = vpop.f32.mrb[3].mxu1 }
 0x11f   : > { %v1243_v22 = vadd.f32 %v1181_v17, %v1143_v3  ;;  %v1184_v23 = vadd.f32 %v1183_v20, %v1182_v18 }
 0x121   : > { %v1244_v25 = vadd.f32 %v1243_v22, %v853_v16  ;;  %v1247_v26 = vadd.f32 %v1184_v23, %v1146_v6 }
 0x123   : > { %v875_v27 = vadd.f32 %v1244_v25, %v1113_v24  ;;  %v1248_v28 = vadd.f32 %v1247_v26, %v856_v21  ;;  %v1185_v29 = vpop.f32.mrb[12].mxu0 }
 0x124   : > { %v1186_v30 = vpop.f32.mrb[13].mxu0 }
 0x125   : > { %v879_v31 = vmax.f32 %v875_v27, 0.0  ;;  %v876_v32 = vadd.f32 %v1248_v28, %v1113_v24  ;;  %v1187_v33 = vadd.f32 %v1186_v30, %v1185_v29  ;;  %v1188_v34 = vpop.f32.mrb[14].mxu0 }
 0x126   : > { %v1189_v35 = vpop.f32.mrb[15].mxu0 }
 0x127   : > { %v1121_v36 = vpack.c.bf16 %v879_v31, %v879_v31  ;;  %v880_v37 = vmax.f32 %v876_v32, 0.0  ;;  %v1241_v38 = vadd.f32 %v1187_v33, %v1149_v9  ;;  %v1190_v39 = vadd.f32 %v1189_v35, %v1188_v34 }
 0x129   : > { %900 = vst.msk [vmem:[%s192_s30] sm:$0xf] %vm899_vm0, %v1121_v36  ;;  %v1122_v40 = vpack.c.bf16 %v880_v37, %v880_v37  ;;  %v1242_v41 = vadd.f32 %v1241_v38, %v1239_v14  ;;  %v1245_v42 = vadd.f32 %v1190_v39, %v1152_v12 }
 0x12b   : > { %901 = vst.msk [vmem:[%s192_s30 + $0x4] sm:$0xf] %vm899_vm0, %v1122_v40  ;;  %v877_v43 = vadd.f32 %v1242_v41, %v1113_v24  ;;  %v1246_v44 = vadd.f32 %v1245_v42, %v1240_v19 }
 0x12d   : > { %v881_v45 = vmax.f32 %v877_v43, 0.0  ;;  %v878_v46 = vadd.f32 %v1246_v44, %v1113_v24 }
 0x12f   : > { %v1123_v47 = vpack.c.bf16 %v881_v45, %v881_v45  ;;  %v882_v48 = vmax.f32 %v878_v46, 0.0 }
 0x131   : > { %902 = vst.msk [vmem:[%s192_s30 + $0x8] sm:$0xf] %vm899_vm0, %v1123_v47  ;;  %v1124_v49 = vpack.c.bf16 %v882_v48, %v882_v48 }
 0x133   : > { %903 = vst.msk [vmem:[%s192_s30 + $0xc] sm:$0xf] %vm899_vm0, %v1124_v49 }
 0x134 PF: > { %s13_s14 = sadd.s32 1, %s1360_s14   ;;  %s1601_s12 = smov %s1356_s13 }
 0x135   : > { %p10_p5 = scmp.ge.s32.totalorder %s13_s14, 4   ;;  %s1602_s13 = smov %s1604_s15 }
 0x137   :  { %12 = sbr.rel (!%p10_p5) target bundleno = 2 (0x2), region = 65 }

// kernel: cnn_embedding1_forward.7
= control target key start
LH: loop header
LB: loop body
LE: loop exit
PB: predicated region body
PF: predicated region fallthrough
CT: control target
= control target key end

     0   :  { %s51_s0 = inlined_call_operand.vmem [shape: bf16[2,128], index: 0, kind: input, shape index: {}]   ;;  %s52_s1 = inlined_call_operand.vmem [shape: f32[1,128], index: 1, kind: input, shape index: {}]   ;;  %s53_s2 = inlined_call_operand.vmem [shape: f32[2,128], index: 2, kind: output, shape index: {}]  }
   0x1   :  { %v11_v0 = vld [vmem:[%s51_s0] sm:$0x1] }
   0x2   :  { %v26_v1 = vld [vmem:[%s52_s1] ss:$0 sm:$0xff]  ;;  %v12_v2 = vunpack.c.l.bf16 %v11_v0 }
   0x4   :  { %v20_v3 = vadd.f32 %v26_v1, %v12_v2 }
   0x6   :  { %21 = vst [vmem:[%s53_s2] sm:$0x3] %v20_v3 }

// kernel: cnn_embedding1_forward.6
= control target key start
LH: loop header
LB: loop body
LE: loop exit
PB: predicated region body
PF: predicated region fallthrough
CT: control target
= control target key end

     0   :  { %s1936_s12 = smov 0   ;;  %s1938_s13 = smov 0   ;;  %s2297_s0 = inlined_call_operand.vmem [shape: bf16[2,24,768], index: 0, kind: input, shape index: {}]   ;;  %s2298_s1 = inlined_call_operand.vmem [shape: bf16[2,768,32], index: 1, kind: input, shape index: {}]   ;;  %s2299_s2 = inlined_call_operand.vmem [shape: f32[1,32], index: 2, kind: input, shape index: {}]   ;;  %s2300_s3 = inlined_call_operand.vmem [shape: bf16[2,16,32], index: 3, kind: output, shape index: {}]  }
   0x1   :  { %s1940_s14 = smov 0  }
   0x2 LB: > { %s25_s15 = sadd.s32 1, %s1910_s13  ;;  %p1405_p0 = scmp.ge.s32.totalorder %s1914_s14, 1  ;;  %s1914_s14 = sphi %s1940_s14, %s13_s14   ;;  %s1910_s13 = sphi %s1938_s13, %s2302_s13   ;;  %s1906_s12 = sphi %s1936_s12, %s2301_s12  }
   0x3   : > { %p27_p1 = scmp.ge.s32.totalorder %s25_s15, 2  ;;  %p151_p2 = scmp.lt.s32.totalorder %s1914_s14, 3 }
   0x5   : > { %s2304_s15 = smov (%p27_p1, %s25_s15), 0  ;;  %p152_p3 = pnand %p1405_p0, %p151_p2 }
   0x6   : > { %v1784_v0 = vld [vmem:[%s2298_s1 + $0x1c0] sm:$0xff] (!%p152_p3)   ;;  %v1788_v4 = vld [vmem:[%s2298_s1 + $0x1c8] sm:$0xff] (!%p152_p3)   ;;  %v1792_v8 = vld [vmem:[%s2298_s1 + $0x1d0] sm:$0xff] (!%p152_p3)   ;;  %p179_p4 = scmp.lt.s32.totalorder (!%p152_p3), %s1906_s12, 1  ;;  %vm1313_vm0 = vcmask (!%p152_p3), 257024  }
   0x7   : > { %155 = sbr.rel (%p152_p3) target bundleno = 332 (0x14c), region = 32  ;;  %v1785_v1 = vld [vmem:[%s2298_s1 + $0x240] sm:$0xff] (!%p152_p3)   ;;  %1627 = vmatprep.subr.bf16.mxu0 (!%p152_p3), %v1784_v0  ;;  %v1789_v5 = vld [vmem:[%s2298_s1 + $0x248] sm:$0xff] (!%p152_p3)   ;;  %v1793_v9 = vld [vmem:[%s2298_s1 + $0x250] sm:$0xff] (!%p152_p3)  }
   0x8   : > { %v1786_v2 = vld [vmem:[%s2298_s1 + $0x180] sm:$0xff] (!%p152_p3)   ;;  %1649 = vmatprep.subr.bf16.mxu1 (!%p152_p3), %v1785_v1  ;;  %v1790_v6 = vld [vmem:[%s2298_s1 + $0x188] sm:$0xff] (!%p152_p3)   ;;  %v1794_v10 = vld [vmem:[%s2298_s1 + $0x190] sm:$0xff] (!%p152_p3)  }
   0x9   : > { %v1787_v3 = vld [vmem:[%s2298_s1 + $0x200] sm:$0xff] (!%p152_p3)   ;;  %1628 = vmatpush3.bf16.msra.mxu0 (!%p152_p3), %v1786_v2  ;;  %v1791_v7 = vld [vmem:[%s2298_s1 + $0x208] sm:$0xff] (!%p152_p3)   ;;  %v1795_v11 = vld [vmem:[%s2298_s1 + $0x210] sm:$0xff] (!%p152_p3)  }
   0xa   : > { %1650 = vmatpush3.bf16.msra.mxu1 (!%p152_p3), %v1787_v3  ;;  %1629 = vmatprep.subr.bf16.mxu0 (!%p152_p3), %v1788_v4  ;;  %v1796_v12 = vld [vmem:[%s2298_s1 + $0x1d8] sm:$0xff] (!%p152_p3)   ;;  %v1800_v16 = vld [vmem:[%s2298_s1 + $0x1e0] sm:$0xff] (!%p152_p3)   ;;  %v1804_v20 = vld [vmem:[%s2298_s1 + $0x1e8] sm:$0xff] (!%p152_p3)  }
   0xb   : > { %1651 = vmatprep.subr.bf16.mxu1 (!%p152_p3), %v1789_v5  ;;  %v1797_v13 = vld [vmem:[%s2298_s1 + $0x258] sm:$0xff] (!%p152_p3)   ;;  %v1801_v17 = vld [vmem:[%s2298_s1 + $0x260] sm:$0xff] (!%p152_p3)   ;;  %v1805_v21 = vld [vmem:[%s2298_s1 + $0x268] sm:$0xff] (!%p152_p3)  }
   0xc   : > { %v1798_v14 = vld [vmem:[%s2298_s1 + $0x198] sm:$0xff] (!%p152_p3)   ;;  %v1802_v18 = vld [vmem:[%s2298_s1 + $0x1a0] sm:$0xff] (!%p152_p3)   ;;  %v1806_v22 = vld [vmem:[%s2298_s1 + $0x1a8] sm:$0xff] (!%p152_p3)  }
   0xd   : > { %1630 = vmatpush3.bf16.msra.mxu0 (!%p152_p3), %v1790_v6  ;;  %v1799_v15 = vld [vmem:[%s2298_s1 + $0x218] sm:$0xff] (!%p152_p3)   ;;  %v1803_v19 = vld [vmem:[%s2298_s1 + $0x220] sm:$0xff] (!%p152_p3)   ;;  %v1807_v23 = vld [vmem:[%s2298_s1 + $0x228] sm:$0xff] (!%p152_p3)  }
   0xe   : > { %1652 = vmatpush3.bf16.msra.mxu1 %v1791_v7  ;;  %1631 = vmatprep.subr.bf16.mxu0 %v1792_v8  ;;  %s2306_s12 = smov (!%p179_p4, %s1906_s12), 1  ;;  %v1808_v24 = vld [vmem:[%s2298_s1 + $0x1f0] sm:$0xff]   ;;  %v1812_v28 = vld [vmem:[%s2298_s1 + $0x1f8] sm:$0xff]   ;;  %v1820_v40 = vld [vmem:[%s2298_s1 + $0x2c0] sm:$0xff]  }
   0xf   : > { %1653 = vmatprep.subr.bf16.mxu1 %v1793_v9  ;;  %v1809_v25 = vld [vmem:[%s2298_s1 + $0x270] sm:$0xff]   ;;  %s1759_s22 = smul.u32 72, %s2306_s12  ;;  %v1813_v29 = vld [vmem:[%s2298_s1 + $0x278] sm:$0xff]   ;;  %v1821_v41 = vld [vmem:[%s2298_s1 + $0x40] sm:$0xff]   ;;  %s1624_s8 = sshll.u32 %s2306_s12, 3 }
  0x10   : > { %v1810_v26 = vld [vmem:[%s2298_s1 + $0x1b0] sm:$0xff]   ;;  %v1814_v30 = vld [vmem:[%s2298_s1 + $0x1b8] sm:$0xff]   ;;  %v1822_v42 = vld [vmem:[%s2298_s1 + $0x280] sm:$0xff]   ;;  %s192_s11 = scalar_lea.vmem %s2300_s3, %s1624_s8 }
  0x11   : > { %1632 = vmatpush3.bf16.msra.mxu0 %v1794_v10  ;;  %v1811_v27 = vld [vmem:[%s2298_s1 + $0x230] sm:$0xff]   ;;  %s2054_s6 = scalar_lea.vmem %s2297_s0, %s1759_s22  ;;  %v1815_v31 = vld [vmem:[%s2298_s1 + $0x238] sm:$0xff]   ;;  %v1823_v43 = vld [vmem:[%s2298_s1] sm:$0xff]  }
  0x12   : > { %1654 = vmatpush3.bf16.msra.mxu1 %v1795_v11  ;;  %1633 = vmatprep.subr.bf16.mxu0 %v1796_v12  ;;  %v2063_v32 = vld [vmem:[%s2054_s6 + $0x18] sm:$0xff]  ;;  %v1412_v33 = vld [vmem:[%s2054_s6 + $0x30] sm:$0xff]  ;;  %v2067_v34 = vld [vmem:[%s2054_s6 + $0x20] sm:$0xff] }
  0x13   : > { %1655 = vmatprep.subr.bf16.mxu1 %v1797_v13  ;;  %v1511_v35 = vcombine.low %v2063_v32, %v1412_v33  ;;  %v1512_v36 = vcombine.high %v2063_v32, %v1412_v33  ;;  %v1413_v37 = vld [vmem:[%s2054_s6 + $0x38] sm:$0xff]  ;;  %v1824_v44 = vld [vmem:[%s2298_s1 + $0x2c8] sm:$0xff]   ;;  %v1828_v48 = vld [vmem:[%s2298_s1 + $0x2d0] sm:$0xff]  }
  0x14   : > { %v1513_v38 = vcombine.low %v2067_v34, %v1413_v37  ;;  %v1514_v39 = vcombine.high %v2067_v34, %v1413_v37  ;;  %v1825_v45 = vld [vmem:[%s2298_s1 + $0x48] sm:$0xff]   ;;  %v1829_v49 = vld [vmem:[%s2298_s1 + $0x50] sm:$0xff]   ;;  %v1832_v52 = vld [vmem:[%s2298_s1 + $0x2d8] sm:$0xff]  }
  0x15   : > { %1634 = vmatpush3.bf16.msra.mxu0 %v1798_v14  ;;  %762 = vmatprep.mubr.bf16.mxu0 %v1512_v36  ;;  %v1826_v46 = vld [vmem:[%s2298_s1 + $0x288] sm:$0xff]   ;;  %v1830_v50 = vld [vmem:[%s2298_s1 + $0x290] sm:$0xff]   ;;  %v1833_v53 = vld [vmem:[%s2298_s1 + $0x58] sm:$0xff]  }
  0x16   : > { %1656 = vmatpush3.bf16.msra.mxu1 %v1799_v15  ;;  %1635 = vmatprep.subr.bf16.mxu0 %v1800_v16  ;;  %v1827_v47 = vld [vmem:[%s2298_s1 + $0x8] sm:$0xff]   ;;  %v1831_v51 = vld [vmem:[%s2298_s1 + $0x10] sm:$0xff]   ;;  %v1834_v54 = vld [vmem:[%s2298_s1 + $0x298] sm:$0xff]  }
  0x17   : > { %1657 = vmatprep.subr.bf16.mxu1 %v1801_v17  ;;  %803 = vmatprep.mubr.bf16.mxu1 %v1514_v39  ;;  %v1835_v55 = vld [vmem:[%s2298_s1 + $0x18] sm:$0xff]   ;;  %v1836_v56 = vld [vmem:[%s2298_s1 + $0x2e0] sm:$0xff]   ;;  %v1840_v60 = vld [vmem:[%s2298_s1 + $0x2e8] sm:$0xff]  }
  0x18   : > { %v1837_v57 = vld [vmem:[%s2298_s1 + $0x60] sm:$0xff]   ;;  %v1841_v61 = vld [vmem:[%s2298_s1 + $0x68] sm:$0xff]   ;;  %v1844_v0 = vld [vmem:[%s2298_s1 + $0x2f0] sm:$0xff]  }
  0x19   : > { %1636 = vmatpush3.bf16.msra.mxu0 %v1802_v18  ;;  %v1838_v58 = vld [vmem:[%s2298_s1 + $0x2a0] sm:$0xff]   ;;  %v1842_v62 = vld [vmem:[%s2298_s1 + $0x2a8] sm:$0xff]   ;;  %v1845_v1 = vld [vmem:[%s2298_s1 + $0x70] sm:$0xff]  }
  0x1a   : > { %1658 = vmatpush3.bf16.msra.mxu1 %v1803_v19  ;;  %1637 = vmatprep.subr.bf16.mxu0 %v1804_v20  ;;  %v1839_v59 = vld [vmem:[%s2298_s1 + $0x20] sm:$0xff]   ;;  %v1843_v63 = vld [vmem:[%s2298_s1 + $0x28] sm:$0xff]   ;;  %v1846_v2 = vld [vmem:[%s2298_s1 + $0x2b0] sm:$0xff]  }
  0x1b   : > { %1659 = vmatprep.subr.bf16.mxu1 %v1805_v21  ;;  %v1847_v3 = vld [vmem:[%s2298_s1 + $0x30] sm:$0xff]   ;;  %v1848_v4 = vld [vmem:[%s2298_s1 + $0x2f8] sm:$0xff]   ;;  %v2171_v8 = vld [vmem:[%s2054_s6 + $0x28] sm:$0xff] }
  0x1c   : > { %v1849_v5 = vld [vmem:[%s2298_s1 + $0x78] sm:$0xff]   ;;  %v1414_v9 = vld [vmem:[%s2054_s6 + $0x40] sm:$0xff]  ;;  %v1860_v19 = vld [vmem:[%s2298_s1 + $0xc8] sm:$0xff]  }
  0x1d   : > { %1638 = vmatpush3.bf16.msra.mxu0 %v1806_v22  ;;  %v1850_v6 = vld [vmem:[%s2298_s1 + $0x2b8] sm:$0xff]   ;;  %v1515_v10 = vcombine.low %v2171_v8, %v1414_v9  ;;  %v1516_v11 = vcombine.high %v2171_v8, %v1414_v9  ;;  %v202_v12 = vld [vmem:[%s2054_s6] sm:$0xff]  ;;  %v1861_v20 = vld [vmem:[%s2298_s1 + $0x148] sm:$0xff]  }
  0x1e   : > { %1660 = vmatpush3.bf16.msra.mxu1 %v1807_v23  ;;  %1639 = vmatprep.subr.bf16.mxu0 %v1808_v24  ;;  %v1851_v7 = vld [vmem:[%s2298_s1 + $0x38] sm:$0xff]   ;;  %v1565_v13 = vcombine.low %v202_v12, %v2063_v32  ;;  %v1566_v14 = vcombine.high %v202_v12, %v2063_v32  ;;  %v1856_v15 = vld [vmem:[%s2298_s1 + $0xc0] sm:$0xff]   ;;  %v1862_v21 = vld [vmem:[%s2298_s1 + $0x88] sm:$0xff]  }
  0x1f   : > { %1661 = vmatprep.subr.bf16.mxu1 %v1809_v25  ;;  %v1857_v16 = vld [vmem:[%s2298_s1 + $0x140] sm:$0xff]   ;;  %v1863_v22 = vld [vmem:[%s2298_s1 + $0x108] sm:$0xff]   ;;  %v1864_v23 = vld [vmem:[%s2298_s1 + $0xd0] sm:$0xff]  }
  0x20   : > { %v1858_v17 = vld [vmem:[%s2298_s1 + $0x80] sm:$0xff]   ;;  %v1865_v24 = vld [vmem:[%s2298_s1 + $0x150] sm:$0xff]   ;;  %v1876_v36 = vld [vmem:[%s2298_s1 + $0xe8] sm:$0xff]  }
  0x21   : > { %1640 = vmatpush3.bf16.msra.mxu0 %v1810_v26  ;;  %v1859_v18 = vld [vmem:[%s2298_s1 + $0x100] sm:$0xff]   ;;  %v1866_v25 = vld [vmem:[%s2298_s1 + $0x90] sm:$0xff]   ;;  %v1877_v37 = vld [vmem:[%s2298_s1 + $0x168] sm:$0xff]  }
  0x22   : > { %1662 = vmatpush3.bf16.msra.mxu1 %v1811_v27  ;;  %1641 = vmatprep.subr.bf16.mxu0 %v1812_v28  ;;  %v1867_v26 = vld [vmem:[%s2298_s1 + $0x110] sm:$0xff]   ;;  %v1868_v27 = vld [vmem:[%s2298_s1 + $0xd8] sm:$0xff]   ;;  %v1873_v32 = vld [vmem:[%s2298_s1 + $0x160] sm:$0xff]  }
  0x23   : > { %1663 = vmatprep.subr.bf16.mxu1 %v1813_v29  ;;  %v1869_v28 = vld [vmem:[%s2298_s1 + $0x158] sm:$0xff]   ;;  %v1874_v33 = vld [vmem:[%s2298_s1 + $0xa0] sm:$0xff]   ;;  %v1879_v39 = vld [vmem:[%s2298_s1 + $0x128] sm:$0xff]  }
  0x24   : > { %v1870_v29 = vld [vmem:[%s2298_s1 + $0x98] sm:$0xff]  }
  0x25   : > { %1642 = vmatpush3.bf16.msra.mxu0 %v1814_v30  ;;  %v1871_v30 = vld [vmem:[%s2298_s1 + $0x118] sm:$0xff]  }
  0x26   : > { %1664 = vmatpush3.bf16.msra.mxu1 %v1815_v31  ;;  %1671 = vmatprep.subr.bf16.mxu0 %v1820_v40  ;;  %v1872_v31 = vld [vmem:[%s2298_s1 + $0xe0] sm:$0xff]   ;;  %v1880_v40 = vld [vmem:[%s2298_s1 + $0xf0] sm:$0xff]  }
  0x27   : > { %1693 = vmatprep.subr.bf16.mxu1 %v1821_v41  ;;  %v1881_v41 = vld [vmem:[%s2298_s1 + $0x170] sm:$0xff]  }
  0x28   : > { %763 = vmatmul.mubr.bf16.vlgmr.msra.gmra.mrb[0].mxu0 %v1511_v35  ;;  %v1875_v35 = vld [vmem:[%s2298_s1 + $0x120] sm:$0xff]  }
  0x29   : > { %804 = vmatmul.mubr.bf16.vlgmr.msra.gmra.mrb[0].mxu1 %v1513_v38  ;;  %1672 = vmatpush3.bf16.msra.mxu0 %v1822_v42  ;;  %v1878_v38 = vld [vmem:[%s2298_s1 + $0xa8] sm:$0xff]   ;;  %v1882_v42 = vld [vmem:[%s2298_s1 + $0xb0] sm:$0xff]  }
  0x2a   : > { %1694 = vmatpush3.bf16.msra.mxu1 %v1823_v43  ;;  %1673 = vmatprep.subr.bf16.mxu0 %v1824_v44  ;;  %v1883_v43 = vld [vmem:[%s2298_s1 + $0x130] sm:$0xff]   ;;  %v1884_v44 = vld [vmem:[%s2298_s1 + $0xf8] sm:$0xff]  }
  0x2b   : > { %1695 = vmatprep.subr.bf16.mxu1 %v1825_v45  ;;  %844 = vmatprep.mubr.bf16.mxu0 %v1516_v11  ;;  %v1885_v45 = vld [vmem:[%s2298_s1 + $0x178] sm:$0xff]  }
  0x2c   : > { %1203 = vmatprep.mubr.bf16.mxu1 %v1566_v14 }
  0x2d   : > { %1674 = vmatpush3.bf16.msra.mxu0 %v1826_v46  ;;  %v1886_v46 = vld [vmem:[%s2298_s1 + $0xb8] sm:$0xff]  }
  0x2e   : > { %1696 = vmatpush3.bf16.msra.mxu1 %v1827_v47  ;;  %1675 = vmatprep.subr.bf16.mxu0 %v1828_v48  ;;  %v1887_v47 = vld [vmem:[%s2298_s1 + $0x138] sm:$0xff]   ;;  %v203_v48 = vld [vmem:[%s2054_s6 + $0x8] sm:$0xff] }
  0x2f   : > { %1697 = vmatprep.subr.bf16.mxu1 %v1829_v49  ;;  %v204_v49 = vld [vmem:[%s2054_s6 + $0x10] sm:$0xff] }
  0x31   : > { %1676 = vmatpush3.bf16.msra.mxu0 %v1830_v50  ;;  %v1567_v50 = vcombine.low %v203_v48, %v2067_v34 }
  0x32   : > { %1698 = vmatpush3.bf16.msra.mxu1 %v1831_v51  ;;  %1677 = vmatprep.subr.bf16.mxu0 %v1832_v52  ;;  %v1568_v51 = vcombine.high %v203_v48, %v2067_v34  ;;  %v1569_v52 = vcombine.low %v204_v49, %v2171_v8 }
  0x33   : > { %1699 = vmatprep.subr.bf16.mxu1 %v1833_v53  ;;  %v1570_v53 = vcombine.high %v204_v49, %v2171_v8 }
  0x35   : > { %1678 = vmatpush3.bf16.msra.mxu0 %v1834_v54 }
  0x36   : > { %1700 = vmatpush3.bf16.msra.mxu1 %v1835_v55  ;;  %1679 = vmatprep.subr.bf16.mxu0 %v1836_v56 }
  0x37   : > { %1701 = vmatprep.subr.bf16.mxu1 %v1837_v57 }
  0x39   : > { %1680 = vmatpush3.bf16.msra.mxu0 %v1838_v58 }
  0x3a   : > { %1702 = vmatpush3.bf16.msra.mxu1 %v1839_v59  ;;  %1681 = vmatprep.subr.bf16.mxu0 %v1840_v60 }
  0x3b   : > { %1703 = vmatprep.subr.bf16.mxu1 %v1841_v61 }
  0x3d   : > { %1682 = vmatpush3.bf16.msra.mxu0 %v1842_v62 }
  0x3e   : > { %1704 = vmatpush3.bf16.msra.mxu1 %v1843_v63  ;;  %1683 = vmatprep.subr.bf16.mxu0 %v1844_v0 }
  0x3f   : > { %1705 = vmatprep.subr.bf16.mxu1 %v1845_v1 }
  0x41   : > { %1684 = vmatpush3.bf16.msra.mxu0 %v1846_v2 }
  0x42   : > { %1706 = vmatpush3.bf16.msra.mxu1 %v1847_v3  ;;  %1685 = vmatprep.subr.bf16.mxu0 %v1848_v4 }
  0x43   : > { %1707 = vmatprep.subr.bf16.mxu1 %v1849_v5 }
  0x45   : > { %1686 = vmatpush3.bf16.msra.mxu0 %v1850_v6 }
  0x46   : > { %1708 = vmatpush3.bf16.msra.mxu1 %v1851_v7  ;;  %1715 = vmatprep.subr.bf16.mxu0 %v1856_v15 }
  0x47   : > { %1737 = vmatprep.subr.bf16.mxu1 %v1857_v16 }
  0x48   : > { %845 = vmatmul.mubr.bf16.vlgmr.msra.gmra.mrb[4].mxu0 %v1515_v10 }
  0x49   : > { %1204 = vmatmul.mubr.bf16.vlgmr.msra.gmra.mrb[4].mxu1 %v1565_v13  ;;  %1716 = vmatpush3.bf16.msra.mxu0 %v1858_v17 }
  0x4a   : > { %1738 = vmatpush3.bf16.msra.mxu1 %v1859_v18  ;;  %1717 = vmatprep.subr.bf16.mxu0 %v1860_v19 }
  0x4b   : > { %1739 = vmatprep.subr.bf16.mxu1 %v1861_v20  ;;  %1244 = vmatprep.mubr.bf16.mxu0 %v1568_v51 }
  0x4c   : > { %1285 = vmatprep.mubr.bf16.mxu1 %v1570_v53 }
  0x4d   : > { %1718 = vmatpush3.bf16.msra.mxu0 %v1862_v21 }
  0x4e   : > { %1740 = vmatpush3.bf16.msra.mxu1 %v1863_v22  ;;  %1719 = vmatprep.subr.bf16.mxu0 %v1864_v23 }
  0x4f   : > { %1741 = vmatprep.subr.bf16.mxu1 %v1865_v24 }
  0x51   : > { %1720 = vmatpush3.bf16.msra.mxu0 %v1866_v25 }
  0x52   : > { %1742 = vmatpush3.bf16.msra.mxu1 %v1867_v26  ;;  %1721 = vmatprep.subr.bf16.mxu0 %v1868_v27 }
  0x53   : > { %1743 = vmatprep.subr.bf16.mxu1 %v1869_v28 }
  0x55   : > { %1722 = vmatpush3.bf16.msra.mxu0 %v1870_v29 }
  0x56   : > { %1744 = vmatpush3.bf16.msra.mxu1 %v1871_v30  ;;  %1723 = vmatprep.subr.bf16.mxu0 %v1872_v31  ;;  %v1619_v31 = vld [vmem:[%s2299_s2] ss:$0 sm:$0xff] }
  0x57   : > { %1745 = vmatprep.subr.bf16.mxu1 %v1873_v32 }
  0x59   : > { %1724 = vmatpush3.bf16.msra.mxu0 %v1874_v33 }
  0x5a   : > { %1746 = vmatpush3.bf16.msra.mxu1 %v1875_v35  ;;  %1725 = vmatprep.subr.bf16.mxu0 %v1876_v36 }
  0x5b   : > { %1747 = vmatprep.subr.bf16.mxu1 %v1877_v37 }
  0x5d   : > { %1726 = vmatpush3.bf16.msra.mxu0 %v1878_v38 }
  0x5e   : > { %1748 = vmatpush3.bf16.msra.mxu1 %v1879_v39  ;;  %1727 = vmatprep.subr.bf16.mxu0 %v1880_v40 }
  0x5f   : > { %1749 = vmatprep.subr.bf16.mxu1 %v1881_v41 }
  0x61   : > { %1728 = vmatpush3.bf16.msra.mxu0 %v1882_v42 }
  0x62   : > { %1750 = vmatpush3.bf16.msra.mxu1 %v1883_v43  ;;  %1729 = vmatprep.subr.bf16.mxu0 %v1884_v44 }
  0x63   : > { %1751 = vmatprep.subr.bf16.mxu1 %v1885_v45 }
  0x65   : > { %1730 = vmatpush3.bf16.msra.mxu0 %v1886_v46 }
  0x66   : > { %1752 = vmatpush3.bf16.msra.mxu1 %v1887_v47 }
  0x68   : > { %1245 = vmatmul.mubr.bf16.vlgmr.msra.gmra.mrb[8].mxu0 %v1567_v50 }
  0x69   : > { %1286 = vmatmul.mubr.bf16.vlgmr.msra.gmra.mrb[8].mxu1 %v1569_v52 }
  0xfb   : > { %v1643_v54 = vpop.f32.mrb[0].mxu0 }
  0xfc   : > { %v1665_v55 = vpop.f32.mrb[0].mxu1  ;;  %v1644_v56 = vpop.f32.mrb[1].mxu0 }
  0xfd   : > { %v1645_v57 = vadd.f32 %v1644_v56, %v1643_v54  ;;  %v1666_v58 = vpop.f32.mrb[1].mxu1  ;;  %v1646_v59 = vpop.f32.mrb[2].mxu0 }
  0xfe   : > { %v1667_v60 = vadd.f32 %v1666_v58, %v1665_v55  ;;  %v1668_v61 = vpop.f32.mrb[2].mxu1  ;;  %v1647_v62 = vpop.f32.mrb[3].mxu0 }
  0xff   : > { %v1648_v63 = vadd.f32 %v1647_v62, %v1646_v59  ;;  %v1669_v34 = vpop.f32.mrb[3].mxu1 }
 0x100   : > { %v806_v0 = vadd.f32 %v1667_v60, %v1645_v57  ;;  %v1670_v1 = vadd.f32 %v1669_v34, %v1668_v61 }
 0x102   : > { %v809_v2 = vadd.f32 %v1670_v1, %v1648_v63 }
 0x11b   : > { %v1687_v3 = vpop.f32.mrb[4].mxu0 }
 0x11c   : > { %v1709_v4 = vpop.f32.mrb[4].mxu1  ;;  %v1688_v5 = vpop.f32.mrb[5].mxu0 }
 0x11d   : > { %v1689_v6 = vadd.f32 %v1688_v5, %v1687_v3  ;;  %v1710_v7 = vpop.f32.mrb[5].mxu1  ;;  %v1690_v8 = vpop.f32.mrb[6].mxu0 }
 0x11e   : > { %v1711_v9 = vadd.f32 %v1710_v7, %v1709_v4  ;;  %v1712_v10 = vpop.f32.mrb[6].mxu1  ;;  %v1691_v11 = vpop.f32.mrb[7].mxu0 }
 0x11f   : > { %v847_v12 = vadd.f32 %v1689_v6, %v806_v0  ;;  %v1692_v13 = vadd.f32 %v1691_v11, %v1690_v8  ;;  %v1713_v14 = vpop.f32.mrb[7].mxu1 }
 0x120   : > { %v1714_v15 = vadd.f32 %v1713_v14, %v1712_v10 }
 0x121   : > { %v1206_v16 = vadd.f32 %v1711_v9, %v847_v12  ;;  %v850_v17 = vadd.f32 %v1692_v13, %v809_v2 }
 0x123   : > { %v1209_v18 = vadd.f32 %v1714_v15, %v850_v17 }
 0x13b   : > { %v1731_v19 = vpop.f32.mrb[8].mxu0 }
 0x13c   : > { %v1753_v20 = vpop.f32.mrb[8].mxu1  ;;  %v1732_v21 = vpop.f32.mrb[9].mxu0 }
 0x13d   : > { %v1733_v22 = vadd.f32 %v1732_v21, %v1731_v19  ;;  %v1754_v23 = vpop.f32.mrb[9].mxu1  ;;  %v1734_v24 = vpop.f32.mrb[10].mxu0 }
 0x13e   : > { %v1755_v25 = vadd.f32 %v1754_v23, %v1753_v20  ;;  %v1756_v26 = vpop.f32.mrb[10].mxu1  ;;  %v1735_v27 = vpop.f32.mrb[11].mxu0 }
 0x13f   : > { %v1247_v28 = vadd.f32 %v1733_v22, %v1206_v16  ;;  %v1736_v29 = vadd.f32 %v1735_v27, %v1734_v24  ;;  %v1757_v30 = vpop.f32.mrb[11].mxu1 }
 0x140   : > { %v1758_v32 = vadd.f32 %v1757_v30, %v1756_v26 }
 0x141   : > { %v1288_v33 = vadd.f32 %v1755_v25, %v1247_v28  ;;  %v1250_v35 = vadd.f32 %v1736_v29, %v1209_v18 }
 0x143   : > { %v1301_v36 = vadd.f32 %v1619_v31, %v1288_v33  ;;  %v1291_v37 = vadd.f32 %v1758_v32, %v1250_v35 }
 0x145   : > { %v1303_v38 = vmax.f32 %v1301_v36, 0.0  ;;  %v1302_v39 = vadd.f32 %v1619_v31, %v1291_v37 }
 0x147   : > { %v1625_v40 = vpack.c.bf16 %v1303_v38, %v1303_v38  ;;  %v1304_v41 = vmax.f32 %v1302_v39, 0.0 }
 0x149   : > { %1314 = vst.msk [vmem:[%s192_s11] sm:$0xf] %vm1313_vm0, %v1625_v40  ;;  %v1626_v42 = vpack.c.bf16 %v1304_v41, %v1304_v41 }
 0x14b   : > { %1315 = vst.msk [vmem:[%s192_s11 + $0x4] sm:$0xf] %vm1313_vm0, %v1626_v42 }
 0x14c PF: > { %s13_s14 = sadd.s32 1, %s1914_s14   ;;  %s2301_s12 = smov %s1910_s13 }
 0x14d   : > { %p10_p5 = scmp.ge.s32.totalorder %s13_s14, 4   ;;  %s2302_s13 = smov %s2304_s15 }
 0x14f   :  { %12 = sbr.rel (!%p10_p5) target bundleno = 2 (0x2), region = 65 }

</bundles_post_ra>
